<compile_context>
chip_gen: v7x
topology: tpu7x:2x2x1
jax: 0.10.0
libtpu: 0.0.40
codegen_flags: <defaults>
</compile_context>

<pallas_src>
import functools
import math

import jax
import jax.numpy as jnp
from jax.experimental import pallas as pl
from jax.experimental.pallas import tpu as pltpu


# --------------------------- tiling helpers ---------------------------

def _tile(dim, target):
    """Pick a tile size: full dim if small / non-divisible, else `target`.

    `target` is chosen as a multiple of (8, 128) so tiled blocks always satisfy
    the TPU layout constraint; falling back to the full dim is always legal.
    """
    if dim <= target or dim % target != 0:
        return dim
    return target


_VMEM_LIMIT = 32 * 1024 * 1024  # safe on v5e/v6e (128 MiB) and v7x (64 MiB)


# --------------------------- tiled linear (x @ w + b) ---------------------------

def _linear_kernel(x_ref, w_ref, b_ref, o_ref, acc_ref):
    @pl.when(pl.program_id(2) == 0)
    def _():
        acc_ref[...] = jnp.zeros_like(acc_ref)

    acc_ref[...] += jnp.dot(x_ref[...], w_ref[...],
                            preferred_element_type=jnp.float32)

    @pl.when(pl.program_id(2) == pl.num_programs(2) - 1)
    def _():
        o_ref[...] = (acc_ref[...] + b_ref[...]).astype(o_ref.dtype)


def linear(x, w, b):
    """x: [M, K], w: [K, N], b: [1, N] -> [M, N] (nn.Linear semantics)."""
    M, K = x.shape
    N = w.shape[1]
    tm = _tile(M, 256)
    tn = _tile(N, 256)
    tk = _tile(K, 512)
    grid = (M // tm, N // tn, K // tk)
    cost = pl.CostEstimate(flops=2 * M * N * K, transcendentals=0,
                           bytes_accessed=4 * (M * K + K * N + M * N))
    return pl.pallas_call(
        _linear_kernel,
        out_shape=jax.ShapeDtypeStruct((M, N), x.dtype),
        grid=grid,
        in_specs=[
            pl.BlockSpec((tm, tk), lambda i, j, k: (i, k)),
            pl.BlockSpec((tk, tn), lambda i, j, k: (k, j)),
            pl.BlockSpec((1, tn), lambda i, j, k: (0, j)),
        ],
        out_specs=pl.BlockSpec((tm, tn), lambda i, j, k: (i, j)),
        scratch_shapes=[pltpu.VMEM((tm, tn), jnp.float32)],
        compiler_params=pltpu.CompilerParams(
            dimension_semantics=("parallel", "parallel", "arbitrary"),
            vmem_limit_bytes=_VMEM_LIMIT),
        cost_estimate=cost,
    )(x, w, b)


# --------------------------- fused residual-add + LayerNorm ---------------------------

def _add_ln_kernel(x_ref, r_ref, g_ref, b_ref, o_ref, *, eps):
    x = x_ref[...].astype(jnp.float32) + r_ref[...].astype(jnp.float32)
    mean = jnp.mean(x, axis=-1, keepdims=True)
    var = jnp.mean((x - mean) ** 2, axis=-1, keepdims=True)
    y = (x - mean) * jax.lax.rsqrt(var + eps)
    o_ref[...] = (y * g_ref[...] + b_ref[...]).astype(o_ref.dtype)


def add_layer_norm(x, residual, gamma, beta, *, eps=1e-12):
    # eps=1e-12 matches the repo's hand-written LayerNorm (nn.LayerNorm default
    # would be 1e-5).
    B, S, D = x.shape
    rows = B * S
    tr = _tile(rows, 256)
    out = pl.pallas_call(
        functools.partial(_add_ln_kernel, eps=eps),
        out_shape=jax.ShapeDtypeStruct((rows, D), x.dtype),
        grid=(rows // tr,),
        in_specs=[
            pl.BlockSpec((tr, D), lambda i: (i, 0)),
            pl.BlockSpec((tr, D), lambda i: (i, 0)),
            pl.BlockSpec((1, D), lambda i: (0, 0)),
            pl.BlockSpec((1, D), lambda i: (0, 0)),
        ],
        out_specs=pl.BlockSpec((tr, D), lambda i: (i, 0)),
        compiler_params=pltpu.CompilerParams(
            dimension_semantics=("parallel",)),
    )(x.reshape(rows, D), residual.reshape(rows, D), gamma, beta)
    return out.reshape(B, S, D)


# --------------------------- fused FFN (lin1 + ReLU + lin2) ---------------------------

def _ffn_kernel(x_ref, w1_ref, b1_ref, w2_ref, b2_ref, o_ref):
    x = x_ref[...]
    h = jnp.dot(x, w1_ref[...], preferred_element_type=jnp.float32) + b1_ref[...]
    h = jnp.maximum(h, 0.0).astype(x.dtype)
    o = jnp.dot(h, w2_ref[...], preferred_element_type=jnp.float32) + b2_ref[...]
    o_ref[...] = o.astype(o_ref.dtype)


def feed_forward(x, p):
    # TODO(synk): for very large d_model*hidden, tile the hidden dimension
    # (K-loop over hidden) instead of keeping both weights fully resident.
    B, S, D = x.shape
    rows = B * S
    H = p["lin1"]["w"].shape[1]
    tr = _tile(rows, 256)
    out = pl.pallas_call(
        _ffn_kernel,
        out_shape=jax.ShapeDtypeStruct((rows, D), x.dtype),
        grid=(rows // tr,),
        in_specs=[
            pl.BlockSpec((tr, D), lambda i: (i, 0)),
            pl.BlockSpec((D, H), lambda i: (0, 0)),
            pl.BlockSpec((1, H), lambda i: (0, 0)),
            pl.BlockSpec((H, D), lambda i: (0, 0)),
            pl.BlockSpec((1, D), lambda i: (0, 0)),
        ],
        out_specs=pl.BlockSpec((tr, D), lambda i: (i, 0)),
        compiler_params=pltpu.CompilerParams(
            dimension_semantics=("parallel",),
            vmem_limit_bytes=_VMEM_LIMIT),
    )(x.reshape(rows, D), p["lin1"]["w"], p["lin1"]["b"],
      p["lin2"]["w"], p["lin2"]["b"])
    return out.reshape(B, S, D)


# --------------------------- multi-head attention ---------------------------

def _attention_kernel(q_ref, k_ref, v_ref, qm_ref, km_ref, o_ref,
                      *, n_head, causal, scale):
    # q_ref: [Sq, D], k_ref/v_ref: [Sk, D], qm_ref: [Sq, 1], km_ref: [1, Sk]
    q = q_ref[...].astype(jnp.float32)
    k = k_ref[...].astype(jnp.float32)
    v = v_ref[...].astype(jnp.float32)
    Sq, D = q.shape
    Sk = k.shape[0]
    dh = D // n_head

    valid = (qm_ref[...] * km_ref[...]) > 0.5            # [Sq, Sk] via broadcast
    if causal:
        row = jax.lax.broadcasted_iota(jnp.int32, (Sq, Sk), 0)
        col = jax.lax.broadcasted_iota(jnp.int32, (Sq, Sk), 1)
        valid = jnp.logical_and(valid, col <= row)

    outs = []
    for h in range(n_head):                              # static unrolled head loop
        qh = q[:, h * dh:(h + 1) * dh]
        kh = k[:, h * dh:(h + 1) * dh]
        vh = v[:, h * dh:(h + 1) * dh]
        s = jnp.dot(qh, kh.T, preferred_element_type=jnp.float32) * scale
        s = jnp.where(valid, s, -10000.0)                # masked_fill(mask==0, -1e4)
        s = s - jnp.max(s, axis=-1, keepdims=True)
        p = jnp.exp(s)
        p = p / jnp.sum(p, axis=-1, keepdims=True)
        outs.append(jnp.dot(p, vh, preferred_element_type=jnp.float32))

    # single lane-dense [Sq, D] store
    o_ref[...] = jnp.concatenate(outs, axis=-1).astype(o_ref.dtype)


def attention(q, k, v, q_mask, k_mask, *, n_head, causal):
    """q: [B,Sq,D], k/v: [B,Sk,D], q_mask: [B,Sq] bool, k_mask: [B,Sk] bool."""
    # TODO(synk): for long sequences, add a flash-style Sk grid axis with
    # online-softmax (m/l/acc VMEM scratch) so the full [Sq,Sk] score matrix is
    # never materialized.
    B, Sq, D = q.shape
    Sk = k.shape[1]
    dh = D // n_head
    scale = 1.0 / math.sqrt(dh)
    qm = q_mask.astype(jnp.float32).reshape(B, Sq, 1)
    km = k_mask.astype(jnp.float32).reshape(B, 1, Sk)
    return pl.pallas_call(
        functools.partial(_attention_kernel, n_head=n_head, causal=causal,
                          scale=scale),
        out_shape=jax.ShapeDtypeStruct((B, Sq, D), q.dtype),
        grid=(B,),
        in_specs=[
            pl.BlockSpec((pl.Squeezed(), Sq, D), lambda b: (b, 0, 0)),
            pl.BlockSpec((pl.Squeezed(), Sk, D), lambda b: (b, 0, 0)),
            pl.BlockSpec((pl.Squeezed(), Sk, D), lambda b: (b, 0, 0)),
            pl.BlockSpec((pl.Squeezed(), Sq, 1), lambda b: (b, 0, 0)),
            pl.BlockSpec((pl.Squeezed(), 1, Sk), lambda b: (b, 0, 0)),
        ],
        out_specs=pl.BlockSpec((pl.Squeezed(), Sq, D), lambda b: (b, 0, 0)),
        compiler_params=pltpu.CompilerParams(
            dimension_semantics=("parallel",)),
    )(q, k, v, qm, km)


def multi_head_attention(x_q, x_kv, q_mask, k_mask, causal, p, n_head):
    B, Sq, D = x_q.shape
    Sk = x_kv.shape[1]
    if x_q is x_kv:
        # self-attention: fuse Q, K, V into one [D, 3D] matmul
        w = jnp.concatenate([p["wq"]["w"], p["wk"]["w"], p["wv"]["w"]], axis=1)
        b = jnp.concatenate([p["wq"]["b"], p["wk"]["b"], p["wv"]["b"]], axis=1)
        qkv = linear(x_q.reshape(B * Sq, D), w, b)
        q = qkv[:, :D].reshape(B, Sq, D)
        k = qkv[:, D:2 * D].reshape(B, Sq, D)
        v = qkv[:, 2 * D:].reshape(B, Sq, D)
    else:
        # cross-attention: Q alone, K+V fused into one [D, 2D] matmul
        q = linear(x_q.reshape(B * Sq, D), p["wq"]["w"], p["wq"]["b"]).reshape(B, Sq, D)
        wkv = jnp.concatenate([p["wk"]["w"], p["wv"]["w"]], axis=1)
        bkv = jnp.concatenate([p["wk"]["b"], p["wv"]["b"]], axis=1)
        kv = linear(x_kv.reshape(B * Sk, D), wkv, bkv)
        k = kv[:, :D].reshape(B, Sk, D)
        v = kv[:, D:].reshape(B, Sk, D)

    o = attention(q, k, v, q_mask, k_mask, n_head=n_head, causal=causal)
    o = linear(o.reshape(B * Sq, D), p["wo"]["w"], p["wo"]["b"]).reshape(B, Sq, D)
    return o


# --------------------------- encoder / decoder layers ---------------------------

def encoder_layer(x, src_valid, p, n_head):
    B, S, _ = x.shape
    ones_q = jnp.ones((B, S), jnp.bool_)
    _x = x
    x = multi_head_attention(x, x, ones_q, src_valid, False, p["attn"], n_head)
    x = add_layer_norm(x, _x, p["norm1"]["gamma"], p["norm1"]["beta"])
    _x = x
    x = feed_forward(x, p["ffn"])
    x = add_layer_norm(x, _x, p["norm2"]["gamma"], p["norm2"]["beta"])
    return x


def decoder_layer(x, enc, tar_valid, src_valid, p, n_head):
    B, T, _ = x.shape
    ones_t = jnp.ones((B, T), jnp.bool_)
    _x = x
    # tar mask = query-pad mask & causal (as in the PyTorch reference)
    x = multi_head_attention(x, x, tar_valid, ones_t, True, p["self_attn"], n_head)
    x = add_layer_norm(x, _x, p["norm1"]["gamma"], p["norm1"]["beta"])
    _x = x
    x = multi_head_attention(x, enc, ones_t, src_valid, False, p["cross_attn"], n_head)
    x = add_layer_norm(x, _x, p["norm2"]["gamma"], p["norm2"]["beta"])
    _x = x
    x = feed_forward(x, p["ffn"])
    x = add_layer_norm(x, _x, p["norm3"]["gamma"], p["norm3"]["beta"])
    return x


def transformer_forward(src, tar, params, *, src_pad_idx, tar_pad_idx, n_head):
    src_valid = src != src_pad_idx          # [B, S_src] — key mask for enc/cross attn
    tar_valid = tar != tar_pad_idx          # [B, S_tar] — query mask for dec self-attn

    # Encoder: TransformerEmbedding (token + sinusoidal positional) + layers.
    # TODO(synk): dropout layers are omitted (inference/eval semantics, p -> 0).
    x = (jnp.take(params["enc_tok_emb"], src, axis=0)
         + params["pos_emb"][: src.shape[1]][None])
    for lp in params["enc_layers"]:
        x = encoder_layer(x, src_valid, lp, n_head)
    enc_src = x

    # Decoder + final vocab projection.
    y = (jnp.take(params["dec_tok_emb"], tar, axis=0)
         + params["pos_emb"][: tar.shape[1]][None])
    for lp in params["dec_layers"]:
        y = decoder_layer(y, enc_src, tar_valid, src_valid, lp, n_head)
    B, T, D = y.shape
    out = linear(y.reshape(B * T, D), params["out_proj"]["w"], params["out_proj"]["b"])
    return out.reshape(B, T, -1)


# --------------------------- parameter init ---------------------------

def _init_linear(key, fan_in, fan_out):
    kw, kb = jax.random.split(key)
    bound = 1.0 / math.sqrt(fan_in)
    w = jax.random.uniform(kw, (fan_in, fan_out), jnp.float32, -bound, bound)
    b = jax.random.uniform(kb, (1, fan_out), jnp.float32, -bound, bound)
    return {"w": w, "b": b}


def _init_mha(key, d_model):
    ks = jax.random.split(key, 4)
    return {
        "wq": _init_linear(ks[0], d_model, d_model),
        "wk": _init_linear(ks[1], d_model, d_model),
        "wv": _init_linear(ks[2], d_model, d_model),
        "wo": _init_linear(ks[3], d_model, d_model),
    }


def _init_ln(d_model):
    return {"gamma": jnp.ones((1, d_model), jnp.float32),
            "beta": jnp.zeros((1, d_model), jnp.float32)}


def _init_enc_layer(key, d_model, hidden):
    k1, k2, k3 = jax.random.split(key, 3)
    return {
        "attn": _init_mha(k1, d_model),
        "norm1": _init_ln(d_model),
        "ffn": {"lin1": _init_linear(k2, d_model, hidden),
                "lin2": _init_linear(k3, hidden, d_model)},
        "norm2": _init_ln(d_model),
    }


def _init_dec_layer(key, d_model, hidden):
    k1, k2, k3, k4 = jax.random.split(key, 4)
    return {
        "self_attn": _init_mha(k1, d_model),
        "norm1": _init_ln(d_model),
        "cross_attn": _init_mha(k2, d_model),
        "norm2": _init_ln(d_model),
        "ffn": {"lin1": _init_linear(k3, d_model, hidden),
                "lin2": _init_linear(k4, hidden, d_model)},
        "norm3": _init_ln(d_model),
    }


def _sinusoid_pos_encoding(max_len, d_model):
    pos = jnp.arange(max_len, dtype=jnp.float32)[:, None]
    two_i = jnp.arange(0, d_model, 2, dtype=jnp.float32)[None, :]
    angle = pos / jnp.power(10000.0, two_i / d_model)
    pe = jnp.zeros((max_len, d_model), jnp.float32)
    pe = pe.at[:, 0::2].set(jnp.sin(angle))
    pe = pe.at[:, 1::2].set(jnp.cos(angle))
    return pe


def init_transformer(key, *, enc_vocab, dec_vocab, max_len, d_model, hidden, n_layers):
    keys = jax.random.split(key, 3 + 2 * n_layers)
    return {
        "enc_tok_emb": jax.random.normal(keys[0], (enc_vocab, d_model), jnp.float32),
        "dec_tok_emb": jax.random.normal(keys[1], (dec_vocab, d_model), jnp.float32),
        "pos_emb": _sinusoid_pos_encoding(max_len, d_model),
        "enc_layers": [_init_enc_layer(keys[2 + i], d_model, hidden)
                       for i in range(n_layers)],
        "dec_layers": [_init_dec_layer(keys[2 + n_layers + i], d_model, hidden)
                       for i in range(n_layers)],
        "out_proj": _init_linear(keys[2 + 2 * n_layers], d_model, dec_vocab),
    }


# ---------------------------------- main ----------------------------------

if __name__ == "__main__":
    B, S_SRC, S_TAR = 2, 8, 8
    D_MODEL, HIDDEN, N_HEAD, N_LAYERS = 32, 64, 4, 2
    ENC_VOCAB, DEC_VOCAB, MAX_LEN = 50, 60, 16
    SRC_PAD_IDX, TAR_PAD_IDX = 0, 0

    key = jax.random.PRNGKey(0)
    k_param, k_src, k_tar = jax.random.split(key, 3)

    params = init_transformer(
        k_param, enc_vocab=ENC_VOCAB, dec_vocab=DEC_VOCAB, max_len=MAX_LEN,
        d_model=D_MODEL, hidden=HIDDEN, n_layers=N_LAYERS)

    src = jax.random.randint(k_src, (B, S_SRC), 2, ENC_VOCAB, dtype=jnp.int32)
    tar = jax.random.randint(k_tar, (B, S_TAR), 2, DEC_VOCAB, dtype=jnp.int32)
    # introduce some padding so the masks are exercised
    src = src.at[1, -2:].set(SRC_PAD_IDX)
    tar = tar.at[1, -3:].set(TAR_PAD_IDX)

    fwd = jax.jit(functools.partial(
        transformer_forward,
        src_pad_idx=SRC_PAD_IDX, tar_pad_idx=TAR_PAD_IDX, n_head=N_HEAD))

    out = fwd(src, tar, params)
    jax.block_until_ready(out)
    assert out.shape == (B, S_TAR, DEC_VOCAB)
    assert bool(jnp.all(jnp.isfinite(out)))
    print("KERNEL_OK")
</pallas_src>

<mosaic_0001>
module attributes {stable_mosaic.version = 11 : i64} {
  func.func @_linear_kernel(%arg0: i32, %arg1: i32, %arg2: i32, %arg3: memref<16x32xf32, #tpu.memory_space<vmem>>, %arg4: memref<32x96xf32, #tpu.memory_space<vmem>>, %arg5: memref<1x96xf32, #tpu.memory_space<vmem>>, %arg6: memref<16x96xf32, #tpu.memory_space<vmem>>, %arg7: memref<16x96xf32, #tpu.memory_space<vmem>>) attributes {dimension_semantics = [#tpu.dimension_semantics<parallel>, #tpu.dimension_semantics<parallel>, #tpu.dimension_semantics<arbitrary>], iteration_bounds = array<i64: 1, 1, 1>, scalar_prefetch = 0 : i64, scratch_operands = 1 : i64, tpu.core_type = #tpu.core_type<tc>, window_params = [{transform_indices = @transform_0, window_bounds = array<i64: 16, 32>}, {transform_indices = @transform_1, window_bounds = array<i64: 32, 96>}, {transform_indices = @transform_2, window_bounds = array<i64: 1, 96>}, {transform_indices = @transform_3, window_bounds = array<i64: 16, 96>}]} {
    %c0_i32 = arith.constant 0 : i32
    %0 = arith.cmpi eq, %arg2, %c0_i32 : i32
    %1 = arith.extui %0 : i1 to i32
    %c0_i32_0 = arith.constant 0 : i32
    %2 = arith.cmpi ne, %1, %c0_i32_0 : i32
    scf.if %2 {
      %cst_10 = arith.constant 0.000000e+00 : f32
      %12 = vector.broadcast %cst_10 : f32 to vector<16x96xf32>
      %c0_11 = arith.constant 0 : index
      %c0_12 = arith.constant 0 : index
      %13 = vector.load %arg7[%c0_11, %c0_12] : memref<16x96xf32, #tpu.memory_space<vmem>>, vector<16x96xf32>
      tpu.vector_store %arg7[%c0_11, %c0_12], %12 {strides = array<i32>} : memref<16x96xf32, #tpu.memory_space<vmem>>, vector<16x96xf32>,
    } else {
    }
    %c0 = arith.constant 0 : index
    %c0_1 = arith.constant 0 : index
    %3 = vector.load %arg7[%c0, %c0_1] : memref<16x96xf32, #tpu.memory_space<vmem>>, vector<16x96xf32>
    %c0_2 = arith.constant 0 : index
    %c0_3 = arith.constant 0 : index
    %4 = vector.load %arg3[%c0_2, %c0_3] : memref<16x32xf32, #tpu.memory_space<vmem>>, vector<16x32xf32>
    %c0_4 = arith.constant 0 : index
    %c0_5 = arith.constant 0 : index
    %5 = vector.load %arg4[%c0_4, %c0_5] : memref<32x96xf32, #tpu.memory_space<vmem>>, vector<32x96xf32>
    %cst = arith.constant dense<0.000000e+00> : vector<16x96xf32>
    %6 = tpu.matmul %4, %5, %cst {dimension_numbers = #tpu.dot_dimension_numbers<[1], [0], [0], [1], [0, 0, 1, 1], [], []>} : vector<16x32xf32>, vector<32x96xf32>, vector<16x96xf32> -> vector<16x96xf32>
    %7 = arith.addf %3, %6 : vector<16x96xf32>
    %c0_6 = arith.constant 0 : index
    %c0_7 = arith.constant 0 : index
    %8 = vector.load %arg7[%c0_6, %c0_7] : memref<16x96xf32, #tpu.memory_space<vmem>>, vector<16x96xf32>
    tpu.vector_store %arg7[%c0_6, %c0_7], %7 {strides = array<i32>} : memref<16x96xf32, #tpu.memory_space<vmem>>, vector<16x96xf32>,
    %c0_i32_8 = arith.constant 0 : i32
    %9 = arith.cmpi eq, %arg2, %c0_i32_8 : i32
    %10 = arith.extui %9 : i1 to i32
    %c0_i32_9 = arith.constant 0 : i32
    %11 = arith.cmpi ne, %10, %c0_i32_9 : i32
    scf.if %11 {
      %c0_10 = arith.constant 0 : index
      %c0_11 = arith.constant 0 : index
      %12 = vector.load %arg7[%c0_10, %c0_11] : memref<16x96xf32, #tpu.memory_space<vmem>>, vector<16x96xf32>
      %c0_12 = arith.constant 0 : index
      %c0_13 = arith.constant 0 : index
      %13 = vector.load %arg5[%c0_12, %c0_13] : memref<1x96xf32, #tpu.memory_space<vmem>>, vector<1x96xf32>
      %14 = vector.broadcast %13 : vector<1x96xf32> to vector<16x96xf32>
      %15 = arith.addf %12, %14 : vector<16x96xf32>
      %c0_14 = arith.constant 0 : index
      %c0_15 = arith.constant 0 : index
      %16 = vector.load %arg6[%c0_14, %c0_15] : memref<16x96xf32, #tpu.memory_space<vmem>>, vector<16x96xf32>
      tpu.vector_store %arg6[%c0_14, %c0_15], %15 {strides = array<i32>} : memref<16x96xf32, #tpu.memory_space<vmem>>, vector<16x96xf32>,
    } else {
    }
    return
  }
  func.func @transform_0(%arg0: i32, %arg1: i32, %arg2: i32) -> (i32, i32) {
    %c0_i32 = arith.constant 0 : i32
    return %arg0, %arg2 : i32, i32
  }
  func.func @transform_1(%arg0: i32, %arg1: i32, %arg2: i32) -> (i32, i32) {
    %c0_i32 = arith.constant 0 : i32
    return %arg2, %arg1 : i32, i32
  }
  func.func @transform_2(%arg0: i32, %arg1: i32, %arg2: i32) -> (i32, i32) {
    %c0_i32 = arith.constant 0 : i32
    %c0_i32_0 = arith.constant 0 : i32
    return %c0_i32, %arg1 : i32, i32
  }
  func.func @transform_3(%arg0: i32, %arg1: i32, %arg2: i32) -> (i32, i32) {
    %c0_i32 = arith.constant 0 : i32
    return %arg0, %arg1 : i32, i32
  }
}

module attributes {stable_mosaic.version = 11 : i64} {
  func.func @_add_ln_kernel(%arg0: i32, %arg1: memref<16x32xf32, #tpu.memory_space<vmem>>, %arg2: memref<16x32xf32, #tpu.memory_space<vmem>>, %arg3: memref<1x32xf32, #tpu.memory_space<vmem>>, %arg4: memref<1x32xf32, #tpu.memory_space<vmem>>, %arg5: memref<16x32xf32, #tpu.memory_space<vmem>>) attributes {dimension_semantics = [#tpu.dimension_semantics<parallel>], iteration_bounds = array<i64: 1>, scalar_prefetch = 0 : i64, scratch_operands = 0 : i64, tpu.core_type = #tpu.core_type<tc>, window_params = [{transform_indices = @transform_0, window_bounds = array<i64: 16, 32>}, {transform_indices = @transform_1, window_bounds = array<i64: 16, 32>}, {pipeline_mode = #tpu.pipeline_mode<synchronous>, transform_indices = @transform_2, window_bounds = array<i64: 1, 32>}, {pipeline_mode = #tpu.pipeline_mode<synchronous>, transform_indices = @transform_3, window_bounds = array<i64: 1, 32>}, {transform_indices = @transform_4, window_bounds = array<i64: 16, 32>}]} {
    %c0 = arith.constant 0 : index
    %c0_0 = arith.constant 0 : index
    %0 = vector.load %arg1[%c0, %c0_0] : memref<16x32xf32, #tpu.memory_space<vmem>>, vector<16x32xf32>
    %c0_1 = arith.constant 0 : index
    %c0_2 = arith.constant 0 : index
    %1 = vector.load %arg2[%c0_1, %c0_2] : memref<16x32xf32, #tpu.memory_space<vmem>>, vector<16x32xf32>
    %2 = arith.addf %0, %1 : vector<16x32xf32>
    %cst = arith.constant dense<0.000000e+00> : vector<16xf32>
    %3 = vector.multi_reduction <add>, %2, %cst [1] : vector<16x32xf32> to vector<16xf32>
    %4 = vector.shape_cast %3 : vector<16xf32> to vector<16x1xf32>
    %cst_3 = arith.constant 3.200000e+01 : f32
    %5 = vector.broadcast %cst_3 : f32 to vector<16x1xf32>
    %6 = arith.divf %4, %5 : vector<16x1xf32>
    %7 = vector.broadcast %6 : vector<16x1xf32> to vector<16x32xf32>
    %8 = arith.subf %2, %7 : vector<16x32xf32>
    %9 = arith.mulf %8, %8 : vector<16x32xf32>
    %cst_4 = arith.constant dense<0.000000e+00> : vector<16xf32>
    %10 = vector.multi_reduction <add>, %9, %cst_4 [1] : vector<16x32xf32> to vector<16xf32>
    %11 = vector.shape_cast %10 : vector<16xf32> to vector<16x1xf32>
    %cst_5 = arith.constant 3.200000e+01 : f32
    %12 = vector.broadcast %cst_5 : f32 to vector<16x1xf32>
    %13 = arith.divf %11, %12 : vector<16x1xf32>
    %14 = vector.broadcast %6 : vector<16x1xf32> to vector<16x32xf32>
    %15 = arith.subf %2, %14 : vector<16x32xf32>
    %cst_6 = arith.constant 9.99999996E-13 : f32
    %16 = vector.broadcast %cst_6 : f32 to vector<16x1xf32>
    %17 = arith.addf %13, %16 : vector<16x1xf32>
    %18 = math.rsqrt %17 : vector<16x1xf32>
    %19 = vector.broadcast %18 : vector<16x1xf32> to vector<16x32xf32>
    %20 = arith.mulf %15, %19 : vector<16x32xf32>
    %c0_7 = arith.constant 0 : index
    %c0_8 = arith.constant 0 : index
    %21 = vector.load %arg3[%c0_7, %c0_8] : memref<1x32xf32, #tpu.memory_space<vmem>>, vector<1x32xf32>
    %22 = vector.broadcast %21 : vector<1x32xf32> to vector<16x32xf32>
    %23 = arith.mulf %20, %22 : vector<16x32xf32>
    %c0_9 = arith.constant 0 : index
    %c0_10 = arith.constant 0 : index
    %24 = vector.load %arg4[%c0_9, %c0_10] : memref<1x32xf32, #tpu.memory_space<vmem>>, vector<1x32xf32>
    %25 = vector.broadcast %24 : vector<1x32xf32> to vector<16x32xf32>
    %26 = arith.addf %23, %25 : vector<16x32xf32>
    %c0_11 = arith.constant 0 : index
    %c0_12 = arith.constant 0 : index
    %27 = vector.load %arg5[%c0_11, %c0_12] : memref<16x32xf32, #tpu.memory_space<vmem>>, vector<16x32xf32>
    tpu.vector_store %arg5[%c0_11, %c0_12], %26 {strides = array<i32>} : memref<16x32xf32, #tpu.memory_space<vmem>>, vector<16x32xf32>,
    return
  }
  func.func @transform_0(%arg0: i32) -> (i32, i32) {
    %c0_i32 = arith.constant 0 : i32
    %c0_i32_0 = arith.constant 0 : i32
    return %arg0, %c0_i32 : i32, i32
  }
  func.func @transform_1(%arg0: i32) -> (i32, i32) {
    %c0_i32 = arith.constant 0 : i32
    %c0_i32_0 = arith.constant 0 : i32
    return %arg0, %c0_i32 : i32, i32
  }
  func.func @transform_2(%arg0: i32) -> (i32, i32) {
    %c0_i32 = arith.constant 0 : i32
    %c0_i32_0 = arith.constant 0 : i32
    %c0_i32_1 = arith.constant 0 : i32
    return %c0_i32, %c0_i32_0 : i32, i32
  }
  func.func @transform_3(%arg0: i32) -> (i32, i32) {
    %c0_i32 = arith.constant 0 : i32
    %c0_i32_0 = arith.constant 0 : i32
    %c0_i32_1 = arith.constant 0 : i32
    return %c0_i32, %c0_i32_0 : i32, i32
  }
  func.func @transform_4(%arg0: i32) -> (i32, i32) {
    %c0_i32 = arith.constant 0 : i32
    %c0_i32_0 = arith.constant 0 : i32
    return %arg0, %c0_i32 : i32, i32
  }
}

module attributes {stable_mosaic.version = 11 : i64} {
  func.func @_attention_kernel(%arg0: i32, %arg1: memref<1x8x32xf32, #tpu.memory_space<vmem>>, %arg2: memref<1x8x32xf32, #tpu.memory_space<vmem>>, %arg3: memref<1x8x32xf32, #tpu.memory_space<vmem>>, %arg4: memref<1x8x1xf32, #tpu.memory_space<vmem>>, %arg5: memref<1x1x8xf32, #tpu.memory_space<vmem>>, %arg6: memref<1x8x32xf32, #tpu.memory_space<vmem>>) attributes {dimension_semantics = [#tpu.dimension_semantics<parallel>], iteration_bounds = array<i64: 2>, scalar_prefetch = 0 : i64, scratch_operands = 0 : i64, tpu.core_type = #tpu.core_type<tc>, window_params = [{transform_indices = @transform_0, window_bounds = array<i64: 1, 8, 32>}, {transform_indices = @transform_1, window_bounds = array<i64: 1, 8, 32>}, {transform_indices = @transform_2, window_bounds = array<i64: 1, 8, 32>}, {transform_indices = @transform_3, window_bounds = array<i64: 1, 8, 1>}, {transform_indices = @transform_4, window_bounds = array<i64: 1, 1, 8>}, {transform_indices = @transform_5, window_bounds = array<i64: 1, 8, 32>}]} {
    %c0 = arith.constant 0 : index
    %c0_0 = arith.constant 0 : index
    %c0_1 = arith.constant 0 : index
    %0 = vector.load %arg1[%c0, %c0_0, %c0_1] : memref<1x8x32xf32, #tpu.memory_space<vmem>>, vector<1x8x32xf32>
    %1 = vector.shape_cast %0 : vector<1x8x32xf32> to vector<8x32xf32>
    %c0_2 = arith.constant 0 : index
    %c0_3 = arith.constant 0 : index
    %c0_4 = arith.constant 0 : index
    %2 = vector.load %arg2[%c0_2, %c0_3, %c0_4] : memref<1x8x32xf32, #tpu.memory_space<vmem>>, vector<1x8x32xf32>
    %3 = vector.shape_cast %2 : vector<1x8x32xf32> to vector<8x32xf32>
    %c0_5 = arith.constant 0 : index
    %c0_6 = arith.constant 0 : index
    %c0_7 = arith.constant 0 : index
    %4 = vector.load %arg3[%c0_5, %c0_6, %c0_7] : memref<1x8x32xf32, #tpu.memory_space<vmem>>, vector<1x8x32xf32>
    %5 = vector.shape_cast %4 : vector<1x8x32xf32> to vector<8x32xf32>
    %c0_8 = arith.constant 0 : index
    %c0_9 = arith.constant 0 : index
    %c0_10 = arith.constant 0 : index
    %6 = vector.load %arg4[%c0_8, %c0_9, %c0_10] : memref<1x8x1xf32, #tpu.memory_space<vmem>>, vector<1x8x1xf32>
    %7 = vector.shape_cast %6 : vector<1x8x1xf32> to vector<8x1xf32>
    %c0_11 = arith.constant 0 : index
    %c0_12 = arith.constant 0 : index
    %c0_13 = arith.constant 0 : index
    %8 = vector.load %arg5[%c0_11, %c0_12, %c0_13] : memref<1x1x8xf32, #tpu.memory_space<vmem>>, vector<1x1x8xf32>
    %9 = vector.shape_cast %8 : vector<1x1x8xf32> to vector<1x8xf32>
    %10 = vector.broadcast %7 : vector<8x1xf32> to vector<8x8xf32>
    %11 = vector.broadcast %9 : vector<1x8xf32> to vector<8x8xf32>
    %12 = arith.mulf %10, %11 : vector<8x8xf32>
    %cst = arith.constant 5.000000e-01 : f32
    %13 = vector.broadcast %cst : f32 to vector<8x8xf32>
    %14 = arith.cmpf ogt, %12, %13 : vector<8x8xf32>
    %15 = vector.extract_strided_slice %1 {offsets = [0, 0], sizes = [8, 8], strides = [1, 1]} : vector<8x32xf32> to vector<8x8xf32>
    %16 = vector.extract_strided_slice %3 {offsets = [0, 0], sizes = [8, 8], strides = [1, 1]} : vector<8x32xf32> to vector<8x8xf32>
    %17 = vector.extract_strided_slice %5 {offsets = [0, 0], sizes = [8, 8], strides = [1, 1]} : vector<8x32xf32> to vector<8x8xf32>
    %18 = tpu.transpose %16, [1, 0] : vector<8x8xf32> -> vector<8x8xf32>
    %cst_14 = arith.constant dense<0.000000e+00> : vector<8x8xf32>
    %19 = tpu.matmul %15, %18, %cst_14 {dimension_numbers = #tpu.dot_dimension_numbers<[1], [0], [0], [1], [0, 0, 1, 1], [], []>} : vector<8x8xf32>, vector<8x8xf32>, vector<8x8xf32> -> vector<8x8xf32>
    %cst_15 = arith.constant 0.353553385 : f32
    %20 = vector.broadcast %cst_15 : f32 to vector<8x8xf32>
    %21 = arith.mulf %19, %20 : vector<8x8xf32>
    %cst_16 = arith.constant -1.000000e+04 : f32
    %22 = vector.broadcast %cst_16 : f32 to vector<8x8xf32>
    %23 = arith.select %14, %21, %22 : vector<8x8xi1>, vector<8x8xf32>
    %cst_17 = arith.constant dense<0xFF800000> : vector<8xf32>
    %24 = vector.multi_reduction <maximumf>, %23, %cst_17 [1] : vector<8x8xf32> to vector<8xf32>
    %25 = vector.shape_cast %24 : vector<8xf32> to vector<8x1xf32>
    %26 = vector.broadcast %25 : vector<8x1xf32> to vector<8x8xf32>
    %27 = arith.subf %23, %26 : vector<8x8xf32>
    %28 = math.exp %27 : vector<8x8xf32>
    %cst_18 = arith.constant dense<0.000000e+00> : vector<8xf32>
    %29 = vector.multi_reduction <add>, %28, %cst_18 [1] : vector<8x8xf32> to vector<8xf32>
    %30 = vector.shape_cast %29 : vector<8xf32> to vector<8x1xf32>
    %31 = vector.broadcast %30 : vector<8x1xf32> to vector<8x8xf32>
    %32 = arith.divf %28, %31 : vector<8x8xf32>
    %cst_19 = arith.constant dense<0.000000e+00> : vector<8x8xf32>
    %33 = tpu.matmul %32, %17, %cst_19 {dimension_numbers = #tpu.dot_dimension_numbers<[1], [0], [0], [1], [0, 0, 1, 1], [], []>} : vector<8x8xf32>, vector<8x8xf32>, vector<8x8xf32> -> vector<8x8xf32>
    %34 = vector.extract_strided_slice %1 {offsets = [0, 8], sizes = [8, 8], strides = [1, 1]} : vector<8x32xf32> to vector<8x8xf32>
    %35 = vector.extract_strided_slice %3 {offsets = [0, 8], sizes = [8, 8], strides = [1, 1]} : vector<8x32xf32> to vector<8x8xf32>
    %36 = vector.extract_strided_slice %5 {offsets = [0, 8], sizes = [8, 8], strides = [1, 1]} : vector<8x32xf32> to vector<8x8xf32>
    %37 = tpu.transpose %35, [1, 0] : vector<8x8xf32> -> vector<8x8xf32>
    %cst_20 = arith.constant dense<0.000000e+00> : vector<8x8xf32>
    %38 = tpu.matmul %34, %37, %cst_20 {dimension_numbers = #tpu.dot_dimension_numbers<[1], [0], [0], [1], [0, 0, 1, 1], [], []>} : vector<8x8xf32>, vector<8x8xf32>, vector<8x8xf32> -> vector<8x8xf32>
    %cst_21 = arith.constant 0.353553385 : f32
    %39 = vector.broadcast %cst_21 : f32 to vector<8x8xf32>
    %40 = arith.mulf %38, %39 : vector<8x8xf32>
    %cst_22 = arith.constant -1.000000e+04 : f32
    %41 = vector.broadcast %cst_22 : f32 to vector<8x8xf32>
    %42 = arith.select %14, %40, %41 : vector<8x8xi1>, vector<8x8xf32>
    %cst_23 = arith.constant dense<0xFF800000> : vector<8xf32>
    %43 = vector.multi_reduction <maximumf>, %42, %cst_23 [1] : vector<8x8xf32> to vector<8xf32>
    %44 = vector.shape_cast %43 : vector<8xf32> to vector<8x1xf32>
    %45 = vector.broadcast %44 : vector<8x1xf32> to vector<8x8xf32>
    %46 = arith.subf %42, %45 : vector<8x8xf32>
    %47 = math.exp %46 : vector<8x8xf32>
    %cst_24 = arith.constant dense<0.000000e+00> : vector<8xf32>
    %48 = vector.multi_reduction <add>, %47, %cst_24 [1] : vector<8x8xf32> to vector<8xf32>
    %49 = vector.shape_cast %48 : vector<8xf32> to vector<8x1xf32>
    %50 = vector.broadcast %49 : vector<8x1xf32> to vector<8x8xf32>
    %51 = arith.divf %47, %50 : vector<8x8xf32>
    %cst_25 = arith.constant dense<0.000000e+00> : vector<8x8xf32>
    %52 = tpu.matmul %51, %36, %cst_25 {dimension_numbers = #tpu.dot_dimension_numbers<[1], [0], [0], [1], [0, 0, 1, 1], [], []>} : vector<8x8xf32>, vector<8x8xf32>, vector<8x8xf32> -> vector<8x8xf32>
    %53 = vector.extract_strided_slice %1 {offsets = [0, 16], sizes = [8, 8], strides = [1, 1]} : vector<8x32xf32> to vector<8x8xf32>
    %54 = vector.extract_strided_slice %3 {offsets = [0, 16], sizes = [8, 8], strides = [1, 1]} : vector<8x32xf32> to vector<8x8xf32>
    %55 = vector.extract_strided_slice %5 {offsets = [0, 16], sizes = [8, 8], strides = [1, 1]} : vector<8x32xf32> to vector<8x8xf32>
    %56 = tpu.transpose %54, [1, 0] : vector<8x8xf32> -> vector<8x8xf32>
    %cst_26 = arith.constant dense<0.000000e+00> : vector<8x8xf32>
    %57 = tpu.matmul %53, %56, %cst_26 {dimension_numbers = #tpu.dot_dimension_numbers<[1], [0], [0], [1], [0, 0, 1, 1], [], []>} : vector<8x8xf32>, vector<8x8xf32>, vector<8x8xf32> -> vector<8x8xf32>
    %cst_27 = arith.constant 0.353553385 : f32
    %58 = vector.broadcast %cst_27 : f32 to vector<8x8xf32>
    %59 = arith.mulf %57, %58 : vector<8x8xf32>
    %cst_28 = arith.constant -1.000000e+04 : f32
    %60 = vector.broadcast %cst_28 : f32 to vector<8x8xf32>
    %61 = arith.select %14, %59, %60 : vector<8x8xi1>, vector<8x8xf32>
    %cst_29 = arith.constant dense<0xFF800000> : vector<8xf32>
    %62 = vector.multi_reduction <maximumf>, %61, %cst_29 [1] : vector<8x8xf32> to vector<8xf32>
    %63 = vector.shape_cast %62 : vector<8xf32> to vector<8x1xf32>
    %64 = vector.broadcast %63 : vector<8x1xf32> to vector<8x8xf32>
    %65 = arith.subf %61, %64 : vector<8x8xf32>
    %66 = math.exp %65 : vector<8x8xf32>
    %cst_30 = arith.constant dense<0.000000e+00> : vector<8xf32>
    %67 = vector.multi_reduction <add>, %66, %cst_30 [1] : vector<8x8xf32> to vector<8xf32>
    %68 = vector.shape_cast %67 : vector<8xf32> to vector<8x1xf32>
    %69 = vector.broadcast %68 : vector<8x1xf32> to vector<8x8xf32>
    %70 = arith.divf %66, %69 : vector<8x8xf32>
    %cst_31 = arith.constant dense<0.000000e+00> : vector<8x8xf32>
    %71 = tpu.matmul %70, %55, %cst_31 {dimension_numbers = #tpu.dot_dimension_numbers<[1], [0], [0], [1], [0, 0, 1, 1], [], []>} : vector<8x8xf32>, vector<8x8xf32>, vector<8x8xf32> -> vector<8x8xf32>
    %72 = vector.extract_strided_slice %1 {offsets = [0, 24], sizes = [8, 8], strides = [1, 1]} : vector<8x32xf32> to vector<8x8xf32>
    %73 = vector.extract_strided_slice %3 {offsets = [0, 24], sizes = [8, 8], strides = [1, 1]} : vector<8x32xf32> to vector<8x8xf32>
    %74 = vector.extract_strided_slice %5 {offsets = [0, 24], sizes = [8, 8], strides = [1, 1]} : vector<8x32xf32> to vector<8x8xf32>
    %75 = tpu.transpose %73, [1, 0] : vector<8x8xf32> -> vector<8x8xf32>
    %cst_32 = arith.constant dense<0.000000e+00> : vector<8x8xf32>
    %76 = tpu.matmul %72, %75, %cst_32 {dimension_numbers = #tpu.dot_dimension_numbers<[1], [0], [0], [1], [0, 0, 1, 1], [], []>} : vector<8x8xf32>, vector<8x8xf32>, vector<8x8xf32> -> vector<8x8xf32>
    %cst_33 = arith.constant 0.353553385 : f32
    %77 = vector.broadcast %cst_33 : f32 to vector<8x8xf32>
    %78 = arith.mulf %76, %77 : vector<8x8xf32>
    %cst_34 = arith.constant -1.000000e+04 : f32
    %79 = vector.broadcast %cst_34 : f32 to vector<8x8xf32>
    %80 = arith.select %14, %78, %79 : vector<8x8xi1>, vector<8x8xf32>
    %cst_35 = arith.constant dense<0xFF800000> : vector<8xf32>
    %81 = vector.multi_reduction <maximumf>, %80, %cst_35 [1] : vector<8x8xf32> to vector<8xf32>
    %82 = vector.shape_cast %81 : vector<8xf32> to vector<8x1xf32>
    %83 = vector.broadcast %82 : vector<8x1xf32> to vector<8x8xf32>
    %84 = arith.subf %80, %83 : vector<8x8xf32>
    %85 = math.exp %84 : vector<8x8xf32>
    %cst_36 = arith.constant dense<0.000000e+00> : vector<8xf32>
    %86 = vector.multi_reduction <add>, %85, %cst_36 [1] : vector<8x8xf32> to vector<8xf32>
    %87 = vector.shape_cast %86 : vector<8xf32> to vector<8x1xf32>
    %88 = vector.broadcast %87 : vector<8x1xf32> to vector<8x8xf32>
    %89 = arith.divf %85, %88 : vector<8x8xf32>
    %cst_37 = arith.constant dense<0.000000e+00> : vector<8x8xf32>
    %90 = tpu.matmul %89, %74, %cst_37 {dimension_numbers = #tpu.dot_dimension_numbers<[1], [0], [0], [1], [0, 0, 1, 1], [], []>} : vector<8x8xf32>, vector<8x8xf32>, vector<8x8xf32> -> vector<8x8xf32>
    %91 = tpu.concatenate %33, %52, %71, %90 in 1 : vector<8x8xf32>, vector<8x8xf32>, vector<8x8xf32>, vector<8x8xf32> -> vector<8x32xf32>
    %c0_38 = arith.constant 0 : index
    %c0_39 = arith.constant 0 : index
    %c0_40 = arith.constant 0 : index
    %92 = vector.load %arg6[%c0_38, %c0_39, %c0_40] : memref<1x8x32xf32, #tpu.memory_space<vmem>>, vector<1x8x32xf32>
    %93 = vector.shape_cast %92 : vector<1x8x32xf32> to vector<8x32xf32>
    %94 = vector.shape_cast %91 : vector<8x32xf32> to vector<1x8x32xf32>
    tpu.vector_store %arg6[%c0_38, %c0_39, %c0_40], %94 {strides = array<i32>} : memref<1x8x32xf32, #tpu.memory_space<vmem>>, vector<1x8x32xf32>,
    return
  }
  func.func @transform_0(%arg0: i32) -> (i32, i32, i32) {
    %c0_i32 = arith.constant 0 : i32
    %c0_i32_0 = arith.constant 0 : i32
    %c0_i32_1 = arith.constant 0 : i32
    return %arg0, %c0_i32, %c0_i32_0 : i32, i32, i32
  }
  func.func @transform_1(%arg0: i32) -> (i32, i32, i32) {
    %c0_i32 = arith.constant 0 : i32
    %c0_i32_0 = arith.constant 0 : i32
    %c0_i32_1 = arith.constant 0 : i32
    return %arg0, %c0_i32, %c0_i32_0 : i32, i32, i32
  }
  func.func @transform_2(%arg0: i32) -> (i32, i32, i32) {
    %c0_i32 = arith.constant 0 : i32
    %c0_i32_0 = arith.constant 0 : i32
    %c0_i32_1 = arith.constant 0 : i32
    return %arg0, %c0_i32, %c0_i32_0 : i32, i32, i32
  }
  func.func @transform_3(%arg0: i32) -> (i32, i32, i32) {
    %c0_i32 = arith.constant 0 : i32
    %c0_i32_0 = arith.constant 0 : i32
    %c0_i32_1 = arith.constant 0 : i32
    return %arg0, %c0_i32, %c0_i32_0 : i32, i32, i32
  }
  func.func @transform_4(%arg0: i32) -> (i32, i32, i32) {
    %c0_i32 = arith.constant 0 : i32
    %c0_i32_0 = arith.constant 0 : i32
    %c0_i32_1 = arith.constant 0 : i32
    return %arg0, %c0_i32, %c0_i32_0 : i32, i32, i32
  }
  func.func @transform_5(%arg0: i32) -> (i32, i32, i32) {
    %c0_i32 = arith.constant 0 : i32
    %c0_i32_0 = arith.constant 0 : i32
    %c0_i32_1 = arith.constant 0 : i32
    return %arg0, %c0_i32, %c0_i32_0 : i32, i32, i32
  }
}

module attributes {stable_mosaic.version = 11 : i64} {
  func.func @_linear_kernel(%arg0: i32, %arg1: i32, %arg2: i32, %arg3: memref<16x32xf32, #tpu.memory_space<vmem>>, %arg4: memref<32x32xf32, #tpu.memory_space<vmem>>, %arg5: memref<1x32xf32, #tpu.memory_space<vmem>>, %arg6: memref<16x32xf32, #tpu.memory_space<vmem>>, %arg7: memref<16x32xf32, #tpu.memory_space<vmem>>) attributes {dimension_semantics = [#tpu.dimension_semantics<parallel>, #tpu.dimension_semantics<parallel>, #tpu.dimension_semantics<arbitrary>], iteration_bounds = array<i64: 1, 1, 1>, scalar_prefetch = 0 : i64, scratch_operands = 1 : i64, tpu.core_type = #tpu.core_type<tc>, window_params = [{transform_indices = @transform_0, window_bounds = array<i64: 16, 32>}, {transform_indices = @transform_1, window_bounds = array<i64: 32, 32>}, {transform_indices = @transform_2, window_bounds = array<i64: 1, 32>}, {transform_indices = @transform_3, window_bounds = array<i64: 16, 32>}]} {
    %c0_i32 = arith.constant 0 : i32
    %0 = arith.cmpi eq, %arg2, %c0_i32 : i32
    %1 = arith.extui %0 : i1 to i32
    %c0_i32_0 = arith.constant 0 : i32
    %2 = arith.cmpi ne, %1, %c0_i32_0 : i32
    scf.if %2 {
      %cst_10 = arith.constant 0.000000e+00 : f32
      %12 = vector.broadcast %cst_10 : f32 to vector<16x32xf32>
      %c0_11 = arith.constant 0 : index
      %c0_12 = arith.constant 0 : index
      %13 = vector.load %arg7[%c0_11, %c0_12] : memref<16x32xf32, #tpu.memory_space<vmem>>, vector<16x32xf32>
      tpu.vector_store %arg7[%c0_11, %c0_12], %12 {strides = array<i32>} : memref<16x32xf32, #tpu.memory_space<vmem>>, vector<16x32xf32>,
    } else {
    }
    %c0 = arith.constant 0 : index
    %c0_1 = arith.constant 0 : index
    %3 = vector.load %arg7[%c0, %c0_1] : memref<16x32xf32, #tpu.memory_space<vmem>>, vector<16x32xf32>
    %c0_2 = arith.constant 0 : index
    %c0_3 = arith.constant 0 : index
    %4 = vector.load %arg3[%c0_2, %c0_3] : memref<16x32xf32, #tpu.memory_space<vmem>>, vector<16x32xf32>
    %c0_4 = arith.constant 0 : index
    %c0_5 = arith.constant 0 : index
    %5 = vector.load %arg4[%c0_4, %c0_5] : memref<32x32xf32, #tpu.memory_space<vmem>>, vector<32x32xf32>
    %cst = arith.constant dense<0.000000e+00> : vector<16x32xf32>
    %6 = tpu.matmul %4, %5, %cst {dimension_numbers = #tpu.dot_dimension_numbers<[1], [0], [0], [1], [0, 0, 1, 1], [], []>} : vector<16x32xf32>, vector<32x32xf32>, vector<16x32xf32> -> vector<16x32xf32>
    %7 = arith.addf %3, %6 : vector<16x32xf32>
    %c0_6 = arith.constant 0 : index
    %c0_7 = arith.constant 0 : index
    %8 = vector.load %arg7[%c0_6, %c0_7] : memref<16x32xf32, #tpu.memory_space<vmem>>, vector<16x32xf32>
    tpu.vector_store %arg7[%c0_6, %c0_7], %7 {strides = array<i32>} : memref<16x32xf32, #tpu.memory_space<vmem>>, vector<16x32xf32>,
    %c0_i32_8 = arith.constant 0 : i32
    %9 = arith.cmpi eq, %arg2, %c0_i32_8 : i32
    %10 = arith.extui %9 : i1 to i32
    %c0_i32_9 = arith.constant 0 : i32
    %11 = arith.cmpi ne, %10, %c0_i32_9 : i32
    scf.if %11 {
      %c0_10 = arith.constant 0 : index
      %c0_11 = arith.constant 0 : index
      %12 = vector.load %arg7[%c0_10, %c0_11] : memref<16x32xf32, #tpu.memory_space<vmem>>, vector<16x32xf32>
      %c0_12 = arith.constant 0 : index
      %c0_13 = arith.constant 0 : index
      %13 = vector.load %arg5[%c0_12, %c0_13] : memref<1x32xf32, #tpu.memory_space<vmem>>, vector<1x32xf32>
      %14 = vector.broadcast %13 : vector<1x32xf32> to vector<16x32xf32>
      %15 = arith.addf %12, %14 : vector<16x32xf32>
      %c0_14 = arith.constant 0 : index
      %c0_15 = arith.constant 0 : index
      %16 = vector.load %arg6[%c0_14, %c0_15] : memref<16x32xf32, #tpu.memory_space<vmem>>, vector<16x32xf32>
      tpu.vector_store %arg6[%c0_14, %c0_15], %15 {strides = array<i32>} : memref<16x32xf32, #tpu.memory_space<vmem>>, vector<16x32xf32>,
    } else {
    }
    return
  }
  func.func @transform_0(%arg0: i32, %arg1: i32, %arg2: i32) -> (i32, i32) {
    %c0_i32 = arith.constant 0 : i32
    return %arg0, %arg2 : i32, i32
  }
  func.func @transform_1(%arg0: i32, %arg1: i32, %arg2: i32) -> (i32, i32) {
    %c0_i32 = arith.constant 0 : i32
    return %arg2, %arg1 : i32, i32
  }
  func.func @transform_2(%arg0: i32, %arg1: i32, %arg2: i32) -> (i32, i32) {
    %c0_i32 = arith.constant 0 : i32
    %c0_i32_0 = arith.constant 0 : i32
    return %c0_i32, %arg1 : i32, i32
  }
  func.func @transform_3(%arg0: i32, %arg1: i32, %arg2: i32) -> (i32, i32) {
    %c0_i32 = arith.constant 0 : i32
    return %arg0, %arg1 : i32, i32
  }
}

module attributes {stable_mosaic.version = 11 : i64} {
  func.func @_ffn_kernel(%arg0: i32, %arg1: memref<16x32xf32, #tpu.memory_space<vmem>>, %arg2: memref<32x64xf32, #tpu.memory_space<vmem>>, %arg3: memref<1x64xf32, #tpu.memory_space<vmem>>, %arg4: memref<64x32xf32, #tpu.memory_space<vmem>>, %arg5: memref<1x32xf32, #tpu.memory_space<vmem>>, %arg6: memref<16x32xf32, #tpu.memory_space<vmem>>) attributes {dimension_semantics = [#tpu.dimension_semantics<parallel>], iteration_bounds = array<i64: 1>, scalar_prefetch = 0 : i64, scratch_operands = 0 : i64, tpu.core_type = #tpu.core_type<tc>, window_params = [{transform_indices = @transform_0, window_bounds = array<i64: 16, 32>}, {pipeline_mode = #tpu.pipeline_mode<synchronous>, transform_indices = @transform_1, window_bounds = array<i64: 32, 64>}, {pipeline_mode = #tpu.pipeline_mode<synchronous>, transform_indices = @transform_2, window_bounds = array<i64: 1, 64>}, {pipeline_mode = #tpu.pipeline_mode<synchronous>, transform_indices = @transform_3, window_bounds = array<i64: 64, 32>}, {pipeline_mode = #tpu.pipeline_mode<synchronous>, transform_indices = @transform_4, window_bounds = array<i64: 1, 32>}, {transform_indices = @transform_5, window_bounds = array<i64: 16, 32>}]} {
    %c0 = arith.constant 0 : index
    %c0_0 = arith.constant 0 : index
    %0 = vector.load %arg1[%c0, %c0_0] : memref<16x32xf32, #tpu.memory_space<vmem>>, vector<16x32xf32>
    %c0_1 = arith.constant 0 : index
    %c0_2 = arith.constant 0 : index
    %1 = vector.load %arg2[%c0_1, %c0_2] : memref<32x64xf32, #tpu.memory_space<vmem>>, vector<32x64xf32>
    %cst = arith.constant dense<0.000000e+00> : vector<16x64xf32>
    %2 = tpu.matmul %0, %1, %cst {dimension_numbers = #tpu.dot_dimension_numbers<[1], [0], [0], [1], [0, 0, 1, 1], [], []>} : vector<16x32xf32>, vector<32x64xf32>, vector<16x64xf32> -> vector<16x64xf32>
    %c0_3 = arith.constant 0 : index
    %c0_4 = arith.constant 0 : index
    %3 = vector.load %arg3[%c0_3, %c0_4] : memref<1x64xf32, #tpu.memory_space<vmem>>, vector<1x64xf32>
    %4 = vector.broadcast %3 : vector<1x64xf32> to vector<16x64xf32>
    %5 = arith.addf %2, %4 : vector<16x64xf32>
    %cst_5 = arith.constant 0.000000e+00 : f32
    %6 = vector.broadcast %cst_5 : f32 to vector<16x64xf32>
    %7 = arith.maximumf %5, %6 : vector<16x64xf32>
    %c0_6 = arith.constant 0 : index
    %c0_7 = arith.constant 0 : index
    %8 = vector.load %arg4[%c0_6, %c0_7] : memref<64x32xf32, #tpu.memory_space<vmem>>, vector<64x32xf32>
    %cst_8 = arith.constant dense<0.000000e+00> : vector<16x32xf32>
    %9 = tpu.matmul %7, %8, %cst_8 {dimension_numbers = #tpu.dot_dimension_numbers<[1], [0], [0], [1], [0, 0, 1, 1], [], []>} : vector<16x64xf32>, vector<64x32xf32>, vector<16x32xf32> -> vector<16x32xf32>
    %c0_9 = arith.constant 0 : index
    %c0_10 = arith.constant 0 : index
    %10 = vector.load %arg5[%c0_9, %c0_10] : memref<1x32xf32, #tpu.memory_space<vmem>>, vector<1x32xf32>
    %11 = vector.broadcast %10 : vector<1x32xf32> to vector<16x32xf32>
    %12 = arith.addf %9, %11 : vector<16x32xf32>
    %c0_11 = arith.constant 0 : index
    %c0_12 = arith.constant 0 : index
    %13 = vector.load %arg6[%c0_11, %c0_12] : memref<16x32xf32, #tpu.memory_space<vmem>>, vector<16x32xf32>
    tpu.vector_store %arg6[%c0_11, %c0_12], %12 {strides = array<i32>} : memref<16x32xf32, #tpu.memory_space<vmem>>, vector<16x32xf32>,
    return
  }
  func.func @transform_0(%arg0: i32) -> (i32, i32) {
    %c0_i32 = arith.constant 0 : i32
    %c0_i32_0 = arith.constant 0 : i32
    return %arg0, %c0_i32 : i32, i32
  }
  func.func @transform_1(%arg0: i32) -> (i32, i32) {
    %c0_i32 = arith.constant 0 : i32
    %c0_i32_0 = arith.constant 0 : i32
    %c0_i32_1 = arith.constant 0 : i32
    return %c0_i32, %c0_i32_0 : i32, i32
  }
  func.func @transform_2(%arg0: i32) -> (i32, i32) {
    %c0_i32 = arith.constant 0 : i32
    %c0_i32_0 = arith.constant 0 : i32
    %c0_i32_1 = arith.constant 0 : i32
    return %c0_i32, %c0_i32_0 : i32, i32
  }
  func.func @transform_3(%arg0: i32) -> (i32, i32) {
    %c0_i32 = arith.constant 0 : i32
    %c0_i32_0 = arith.constant 0 : i32
    %c0_i32_1 = arith.constant 0 : i32
    return %c0_i32, %c0_i32_0 : i32, i32
  }
  func.func @transform_4(%arg0: i32) -> (i32, i32) {
    %c0_i32 = arith.constant 0 : i32
    %c0_i32_0 = arith.constant 0 : i32
    %c0_i32_1 = arith.constant 0 : i32
    return %c0_i32, %c0_i32_0 : i32, i32
  }
  func.func @transform_5(%arg0: i32) -> (i32, i32) {
    %c0_i32 = arith.constant 0 : i32
    %c0_i32_0 = arith.constant 0 : i32
    return %arg0, %c0_i32 : i32, i32
  }
}

module attributes {stable_mosaic.version = 11 : i64} {
  func.func @_linear_kernel(%arg0: i32, %arg1: i32, %arg2: i32, %arg3: memref<16x32xf32, #tpu.memory_space<vmem>>, %arg4: memref<32x64xf32, #tpu.memory_space<vmem>>, %arg5: memref<1x64xf32, #tpu.memory_space<vmem>>, %arg6: memref<16x64xf32, #tpu.memory_space<vmem>>, %arg7: memref<16x64xf32, #tpu.memory_space<vmem>>) attributes {dimension_semantics = [#tpu.dimension_semantics<parallel>, #tpu.dimension_semantics<parallel>, #tpu.dimension_semantics<arbitrary>], iteration_bounds = array<i64: 1, 1, 1>, scalar_prefetch = 0 : i64, scratch_operands = 1 : i64, tpu.core_type = #tpu.core_type<tc>, window_params = [{transform_indices = @transform_0, window_bounds = array<i64: 16, 32>}, {transform_indices = @transform_1, window_bounds = array<i64: 32, 64>}, {transform_indices = @transform_2, window_bounds = array<i64: 1, 64>}, {transform_indices = @transform_3, window_bounds = array<i64: 16, 64>}]} {
    %c0_i32 = arith.constant 0 : i32
    %0 = arith.cmpi eq, %arg2, %c0_i32 : i32
    %1 = arith.extui %0 : i1 to i32
    %c0_i32_0 = arith.constant 0 : i32
    %2 = arith.cmpi ne, %1, %c0_i32_0 : i32
    scf.if %2 {
      %cst_10 = arith.constant 0.000000e+00 : f32
      %12 = vector.broadcast %cst_10 : f32 to vector<16x64xf32>
      %c0_11 = arith.constant 0 : index
      %c0_12 = arith.constant 0 : index
      %13 = vector.load %arg7[%c0_11, %c0_12] : memref<16x64xf32, #tpu.memory_space<vmem>>, vector<16x64xf32>
      tpu.vector_store %arg7[%c0_11, %c0_12], %12 {strides = array<i32>} : memref<16x64xf32, #tpu.memory_space<vmem>>, vector<16x64xf32>,
    } else {
    }
    %c0 = arith.constant 0 : index
    %c0_1 = arith.constant 0 : index
    %3 = vector.load %arg7[%c0, %c0_1] : memref<16x64xf32, #tpu.memory_space<vmem>>, vector<16x64xf32>
    %c0_2 = arith.constant 0 : index
    %c0_3 = arith.constant 0 : index
    %4 = vector.load %arg3[%c0_2, %c0_3] : memref<16x32xf32, #tpu.memory_space<vmem>>, vector<16x32xf32>
    %c0_4 = arith.constant 0 : index
    %c0_5 = arith.constant 0 : index
    %5 = vector.load %arg4[%c0_4, %c0_5] : memref<32x64xf32, #tpu.memory_space<vmem>>, vector<32x64xf32>
    %cst = arith.constant dense<0.000000e+00> : vector<16x64xf32>
    %6 = tpu.matmul %4, %5, %cst {dimension_numbers = #tpu.dot_dimension_numbers<[1], [0], [0], [1], [0, 0, 1, 1], [], []>} : vector<16x32xf32>, vector<32x64xf32>, vector<16x64xf32> -> vector<16x64xf32>
    %7 = arith.addf %3, %6 : vector<16x64xf32>
    %c0_6 = arith.constant 0 : index
    %c0_7 = arith.constant 0 : index
    %8 = vector.load %arg7[%c0_6, %c0_7] : memref<16x64xf32, #tpu.memory_space<vmem>>, vector<16x64xf32>
    tpu.vector_store %arg7[%c0_6, %c0_7], %7 {strides = array<i32>} : memref<16x64xf32, #tpu.memory_space<vmem>>, vector<16x64xf32>,
    %c0_i32_8 = arith.constant 0 : i32
    %9 = arith.cmpi eq, %arg2, %c0_i32_8 : i32
    %10 = arith.extui %9 : i1 to i32
    %c0_i32_9 = arith.constant 0 : i32
    %11 = arith.cmpi ne, %10, %c0_i32_9 : i32
    scf.if %11 {
      %c0_10 = arith.constant 0 : index
      %c0_11 = arith.constant 0 : index
      %12 = vector.load %arg7[%c0_10, %c0_11] : memref<16x64xf32, #tpu.memory_space<vmem>>, vector<16x64xf32>
      %c0_12 = arith.constant 0 : index
      %c0_13 = arith.constant 0 : index
      %13 = vector.load %arg5[%c0_12, %c0_13] : memref<1x64xf32, #tpu.memory_space<vmem>>, vector<1x64xf32>
      %14 = vector.broadcast %13 : vector<1x64xf32> to vector<16x64xf32>
      %15 = arith.addf %12, %14 : vector<16x64xf32>
      %c0_14 = arith.constant 0 : index
      %c0_15 = arith.constant 0 : index
      %16 = vector.load %arg6[%c0_14, %c0_15] : memref<16x64xf32, #tpu.memory_space<vmem>>, vector<16x64xf32>
      tpu.vector_store %arg6[%c0_14, %c0_15], %15 {strides = array<i32>} : memref<16x64xf32, #tpu.memory_space<vmem>>, vector<16x64xf32>,
    } else {
    }
    return
  }
  func.func @transform_0(%arg0: i32, %arg1: i32, %arg2: i32) -> (i32, i32) {
    %c0_i32 = arith.constant 0 : i32
    return %arg0, %arg2 : i32, i32
  }
  func.func @transform_1(%arg0: i32, %arg1: i32, %arg2: i32) -> (i32, i32) {
    %c0_i32 = arith.constant 0 : i32
    return %arg2, %arg1 : i32, i32
  }
  func.func @transform_2(%arg0: i32, %arg1: i32, %arg2: i32) -> (i32, i32) {
    %c0_i32 = arith.constant 0 : i32
    %c0_i32_0 = arith.constant 0 : i32
    return %c0_i32, %arg1 : i32, i32
  }
  func.func @transform_3(%arg0: i32, %arg1: i32, %arg2: i32) -> (i32, i32) {
    %c0_i32 = arith.constant 0 : i32
    return %arg0, %arg1 : i32, i32
  }
}

module attributes {stable_mosaic.version = 11 : i64} {
  func.func @_linear_kernel(%arg0: i32, %arg1: i32, %arg2: i32, %arg3: memref<16x32xf32, #tpu.memory_space<vmem>>, %arg4: memref<32x60xf32, #tpu.memory_space<vmem>>, %arg5: memref<1x60xf32, #tpu.memory_space<vmem>>, %arg6: memref<16x60xf32, #tpu.memory_space<vmem>>, %arg7: memref<16x60xf32, #tpu.memory_space<vmem>>) attributes {dimension_semantics = [#tpu.dimension_semantics<parallel>, #tpu.dimension_semantics<parallel>, #tpu.dimension_semantics<arbitrary>], iteration_bounds = array<i64: 1, 1, 1>, scalar_prefetch = 0 : i64, scratch_operands = 1 : i64, tpu.core_type = #tpu.core_type<tc>, window_params = [{transform_indices = @transform_0, window_bounds = array<i64: 16, 32>}, {transform_indices = @transform_1, window_bounds = array<i64: 32, 60>}, {transform_indices = @transform_2, window_bounds = array<i64: 1, 60>}, {transform_indices = @transform_3, window_bounds = array<i64: 16, 60>}]} {
    %c0_i32 = arith.constant 0 : i32
    %0 = arith.cmpi eq, %arg2, %c0_i32 : i32
    %1 = arith.extui %0 : i1 to i32
    %c0_i32_0 = arith.constant 0 : i32
    %2 = arith.cmpi ne, %1, %c0_i32_0 : i32
    scf.if %2 {
      %cst_10 = arith.constant 0.000000e+00 : f32
      %12 = vector.broadcast %cst_10 : f32 to vector<16x60xf32>
      %c0_11 = arith.constant 0 : index
      %c0_12 = arith.constant 0 : index
      %13 = vector.load %arg7[%c0_11, %c0_12] : memref<16x60xf32, #tpu.memory_space<vmem>>, vector<16x60xf32>
      tpu.vector_store %arg7[%c0_11, %c0_12], %12 {strides = array<i32>} : memref<16x60xf32, #tpu.memory_space<vmem>>, vector<16x60xf32>,
    } else {
    }
    %c0 = arith.constant 0 : index
    %c0_1 = arith.constant 0 : index
    %3 = vector.load %arg7[%c0, %c0_1] : memref<16x60xf32, #tpu.memory_space<vmem>>, vector<16x60xf32>
    %c0_2 = arith.constant 0 : index
    %c0_3 = arith.constant 0 : index
    %4 = vector.load %arg3[%c0_2, %c0_3] : memref<16x32xf32, #tpu.memory_space<vmem>>, vector<16x32xf32>
    %c0_4 = arith.constant 0 : index
    %c0_5 = arith.constant 0 : index
    %5 = vector.load %arg4[%c0_4, %c0_5] : memref<32x60xf32, #tpu.memory_space<vmem>>, vector<32x60xf32>
    %cst = arith.constant dense<0.000000e+00> : vector<16x60xf32>
    %6 = tpu.matmul %4, %5, %cst {dimension_numbers = #tpu.dot_dimension_numbers<[1], [0], [0], [1], [0, 0, 1, 1], [], []>} : vector<16x32xf32>, vector<32x60xf32>, vector<16x60xf32> -> vector<16x60xf32>
    %7 = arith.addf %3, %6 : vector<16x60xf32>
    %c0_6 = arith.constant 0 : index
    %c0_7 = arith.constant 0 : index
    %8 = vector.load %arg7[%c0_6, %c0_7] : memref<16x60xf32, #tpu.memory_space<vmem>>, vector<16x60xf32>
    tpu.vector_store %arg7[%c0_6, %c0_7], %7 {strides = array<i32>} : memref<16x60xf32, #tpu.memory_space<vmem>>, vector<16x60xf32>,
    %c0_i32_8 = arith.constant 0 : i32
    %9 = arith.cmpi eq, %arg2, %c0_i32_8 : i32
    %10 = arith.extui %9 : i1 to i32
    %c0_i32_9 = arith.constant 0 : i32
    %11 = arith.cmpi ne, %10, %c0_i32_9 : i32
    scf.if %11 {
      %c0_10 = arith.constant 0 : index
      %c0_11 = arith.constant 0 : index
      %12 = vector.load %arg7[%c0_10, %c0_11] : memref<16x60xf32, #tpu.memory_space<vmem>>, vector<16x60xf32>
      %c0_12 = arith.constant 0 : index
      %c0_13 = arith.constant 0 : index
      %13 = vector.load %arg5[%c0_12, %c0_13] : memref<1x60xf32, #tpu.memory_space<vmem>>, vector<1x60xf32>
      %14 = vector.broadcast %13 : vector<1x60xf32> to vector<16x60xf32>
      %15 = arith.addf %12, %14 : vector<16x60xf32>
      %c0_14 = arith.constant 0 : index
      %c0_15 = arith.constant 0 : index
      %16 = vector.load %arg6[%c0_14, %c0_15] : memref<16x60xf32, #tpu.memory_space<vmem>>, vector<16x60xf32>
      tpu.vector_store %arg6[%c0_14, %c0_15], %15 {strides = array<i32>} : memref<16x60xf32, #tpu.memory_space<vmem>>, vector<16x60xf32>,
    } else {
    }
    return
  }
  func.func @transform_0(%arg0: i32, %arg1: i32, %arg2: i32) -> (i32, i32) {
    %c0_i32 = arith.constant 0 : i32
    return %arg0, %arg2 : i32, i32
  }
  func.func @transform_1(%arg0: i32, %arg1: i32, %arg2: i32) -> (i32, i32) {
    %c0_i32 = arith.constant 0 : i32
    return %arg2, %arg1 : i32, i32
  }
  func.func @transform_2(%arg0: i32, %arg1: i32, %arg2: i32) -> (i32, i32) {
    %c0_i32 = arith.constant 0 : i32
    %c0_i32_0 = arith.constant 0 : i32
    return %c0_i32, %arg1 : i32, i32
  }
  func.func @transform_3(%arg0: i32, %arg1: i32, %arg2: i32) -> (i32, i32) {
    %c0_i32 = arith.constant 0 : i32
    return %arg0, %arg1 : i32, i32
  }
}

module attributes {stable_mosaic.version = 11 : i64} {
  func.func @_attention_kernel(%arg0: i32, %arg1: memref<1x8x32xf32, #tpu.memory_space<vmem>>, %arg2: memref<1x8x32xf32, #tpu.memory_space<vmem>>, %arg3: memref<1x8x32xf32, #tpu.memory_space<vmem>>, %arg4: memref<1x8x1xf32, #tpu.memory_space<vmem>>, %arg5: memref<1x1x8xf32, #tpu.memory_space<vmem>>, %arg6: memref<1x8x32xf32, #tpu.memory_space<vmem>>) attributes {dimension_semantics = [#tpu.dimension_semantics<parallel>], iteration_bounds = array<i64: 2>, scalar_prefetch = 0 : i64, scratch_operands = 0 : i64, tpu.core_type = #tpu.core_type<tc>, window_params = [{transform_indices = @transform_0, window_bounds = array<i64: 1, 8, 32>}, {transform_indices = @transform_1, window_bounds = array<i64: 1, 8, 32>}, {transform_indices = @transform_2, window_bounds = array<i64: 1, 8, 32>}, {transform_indices = @transform_3, window_bounds = array<i64: 1, 8, 1>}, {transform_indices = @transform_4, window_bounds = array<i64: 1, 1, 8>}, {transform_indices = @transform_5, window_bounds = array<i64: 1, 8, 32>}]} {
    %c0 = arith.constant 0 : index
    %c0_0 = arith.constant 0 : index
    %c0_1 = arith.constant 0 : index
    %0 = vector.load %arg1[%c0, %c0_0, %c0_1] : memref<1x8x32xf32, #tpu.memory_space<vmem>>, vector<1x8x32xf32>
    %1 = vector.shape_cast %0 : vector<1x8x32xf32> to vector<8x32xf32>
    %c0_2 = arith.constant 0 : index
    %c0_3 = arith.constant 0 : index
    %c0_4 = arith.constant 0 : index
    %2 = vector.load %arg2[%c0_2, %c0_3, %c0_4] : memref<1x8x32xf32, #tpu.memory_space<vmem>>, vector<1x8x32xf32>
    %3 = vector.shape_cast %2 : vector<1x8x32xf32> to vector<8x32xf32>
    %c0_5 = arith.constant 0 : index
    %c0_6 = arith.constant 0 : index
    %c0_7 = arith.constant 0 : index
    %4 = vector.load %arg3[%c0_5, %c0_6, %c0_7] : memref<1x8x32xf32, #tpu.memory_space<vmem>>, vector<1x8x32xf32>
    %5 = vector.shape_cast %4 : vector<1x8x32xf32> to vector<8x32xf32>
    %c0_8 = arith.constant 0 : index
    %c0_9 = arith.constant 0 : index
    %c0_10 = arith.constant 0 : index
    %6 = vector.load %arg4[%c0_8, %c0_9, %c0_10] : memref<1x8x1xf32, #tpu.memory_space<vmem>>, vector<1x8x1xf32>
    %7 = vector.shape_cast %6 : vector<1x8x1xf32> to vector<8x1xf32>
    %c0_11 = arith.constant 0 : index
    %c0_12 = arith.constant 0 : index
    %c0_13 = arith.constant 0 : index
    %8 = vector.load %arg5[%c0_11, %c0_12, %c0_13] : memref<1x1x8xf32, #tpu.memory_space<vmem>>, vector<1x1x8xf32>
    %9 = vector.shape_cast %8 : vector<1x1x8xf32> to vector<1x8xf32>
    %10 = vector.broadcast %7 : vector<8x1xf32> to vector<8x8xf32>
    %11 = vector.broadcast %9 : vector<1x8xf32> to vector<8x8xf32>
    %12 = arith.mulf %10, %11 : vector<8x8xf32>
    %cst = arith.constant 5.000000e-01 : f32
    %13 = vector.broadcast %cst : f32 to vector<8x8xf32>
    %14 = arith.cmpf ogt, %12, %13 : vector<8x8xf32>
    %15 = tpu.iota {dimensions = array<i32: 0>} : vector<8x8xi32>
    %16 = tpu.iota {dimensions = array<i32: 1>} : vector<8x8xi32>
    %17 = arith.cmpi sle, %16, %15 : vector<8x8xi32>
    %18 = arith.andi %14, %17 : vector<8x8xi1>
    %19 = vector.extract_strided_slice %1 {offsets = [0, 0], sizes = [8, 8], strides = [1, 1]} : vector<8x32xf32> to vector<8x8xf32>
    %20 = vector.extract_strided_slice %3 {offsets = [0, 0], sizes = [8, 8], strides = [1, 1]} : vector<8x32xf32> to vector<8x8xf32>
    %21 = vector.extract_strided_slice %5 {offsets = [0, 0], sizes = [8, 8], strides = [1, 1]} : vector<8x32xf32> to vector<8x8xf32>
    %22 = tpu.transpose %20, [1, 0] : vector<8x8xf32> -> vector<8x8xf32>
    %cst_14 = arith.constant dense<0.000000e+00> : vector<8x8xf32>
    %23 = tpu.matmul %19, %22, %cst_14 {dimension_numbers = #tpu.dot_dimension_numbers<[1], [0], [0], [1], [0, 0, 1, 1], [], []>} : vector<8x8xf32>, vector<8x8xf32>, vector<8x8xf32> -> vector<8x8xf32>
    %cst_15 = arith.constant 0.353553385 : f32
    %24 = vector.broadcast %cst_15 : f32 to vector<8x8xf32>
    %25 = arith.mulf %23, %24 : vector<8x8xf32>
    %cst_16 = arith.constant -1.000000e+04 : f32
    %26 = vector.broadcast %cst_16 : f32 to vector<8x8xf32>
    %27 = arith.select %18, %25, %26 : vector<8x8xi1>, vector<8x8xf32>
    %cst_17 = arith.constant dense<0xFF800000> : vector<8xf32>
    %28 = vector.multi_reduction <maximumf>, %27, %cst_17 [1] : vector<8x8xf32> to vector<8xf32>
    %29 = vector.shape_cast %28 : vector<8xf32> to vector<8x1xf32>
    %30 = vector.broadcast %29 : vector<8x1xf32> to vector<8x8xf32>
    %31 = arith.subf %27, %30 : vector<8x8xf32>
    %32 = math.exp %31 : vector<8x8xf32>
    %cst_18 = arith.constant dense<0.000000e+00> : vector<8xf32>
    %33 = vector.multi_reduction <add>, %32, %cst_18 [1] : vector<8x8xf32> to vector<8xf32>
    %34 = vector.shape_cast %33 : vector<8xf32> to vector<8x1xf32>
    %35 = vector.broadcast %34 : vector<8x1xf32> to vector<8x8xf32>
    %36 = arith.divf %32, %35 : vector<8x8xf32>
    %cst_19 = arith.constant dense<0.000000e+00> : vector<8x8xf32>
    %37 = tpu.matmul %36, %21, %cst_19 {dimension_numbers = #tpu.dot_dimension_numbers<[1], [0], [0], [1], [0, 0, 1, 1], [], []>} : vector<8x8xf32>, vector<8x8xf32>, vector<8x8xf32> -> vector<8x8xf32>
    %38 = vector.extract_strided_slice %1 {offsets = [0, 8], sizes = [8, 8], strides = [1, 1]} : vector<8x32xf32> to vector<8x8xf32>
    %39 = vector.extract_strided_slice %3 {offsets = [0, 8], sizes = [8, 8], strides = [1, 1]} : vector<8x32xf32> to vector<8x8xf32>
    %40 = vector.extract_strided_slice %5 {offsets = [0, 8], sizes = [8, 8], strides = [1, 1]} : vector<8x32xf32> to vector<8x8xf32>
    %41 = tpu.transpose %39, [1, 0] : vector<8x8xf32> -> vector<8x8xf32>
    %cst_20 = arith.constant dense<0.000000e+00> : vector<8x8xf32>
    %42 = tpu.matmul %38, %41, %cst_20 {dimension_numbers = #tpu.dot_dimension_numbers<[1], [0], [0], [1], [0, 0, 1, 1], [], []>} : vector<8x8xf32>, vector<8x8xf32>, vector<8x8xf32> -> vector<8x8xf32>
    %cst_21 = arith.constant 0.353553385 : f32
    %43 = vector.broadcast %cst_21 : f32 to vector<8x8xf32>
    %44 = arith.mulf %42, %43 : vector<8x8xf32>
    %cst_22 = arith.constant -1.000000e+04 : f32
    %45 = vector.broadcast %cst_22 : f32 to vector<8x8xf32>
    %46 = arith.select %18, %44, %45 : vector<8x8xi1>, vector<8x8xf32>
    %cst_23 = arith.constant dense<0xFF800000> : vector<8xf32>
    %47 = vector.multi_reduction <maximumf>, %46, %cst_23 [1] : vector<8x8xf32> to vector<8xf32>
    %48 = vector.shape_cast %47 : vector<8xf32> to vector<8x1xf32>
    %49 = vector.broadcast %48 : vector<8x1xf32> to vector<8x8xf32>
    %50 = arith.subf %46, %49 : vector<8x8xf32>
    %51 = math.exp %50 : vector<8x8xf32>
    %cst_24 = arith.constant dense<0.000000e+00> : vector<8xf32>
    %52 = vector.multi_reduction <add>, %51, %cst_24 [1] : vector<8x8xf32> to vector<8xf32>
    %53 = vector.shape_cast %52 : vector<8xf32> to vector<8x1xf32>
    %54 = vector.broadcast %53 : vector<8x1xf32> to vector<8x8xf32>
    %55 = arith.divf %51, %54 : vector<8x8xf32>
    %cst_25 = arith.constant dense<0.000000e+00> : vector<8x8xf32>
    %56 = tpu.matmul %55, %40, %cst_25 {dimension_numbers = #tpu.dot_dimension_numbers<[1], [0], [0], [1], [0, 0, 1, 1], [], []>} : vector<8x8xf32>, vector<8x8xf32>, vector<8x8xf32> -> vector<8x8xf32>
    %57 = vector.extract_strided_slice %1 {offsets = [0, 16], sizes = [8, 8], strides = [1, 1]} : vector<8x32xf32> to vector<8x8xf32>
    %58 = vector.extract_strided_slice %3 {offsets = [0, 16], sizes = [8, 8], strides = [1, 1]} : vector<8x32xf32> to vector<8x8xf32>
    %59 = vector.extract_strided_slice %5 {offsets = [0, 16], sizes = [8, 8], strides = [1, 1]} : vector<8x32xf32> to vector<8x8xf32>
    %60 = tpu.transpose %58, [1, 0] : vector<8x8xf32> -> vector<8x8xf32>
    %cst_26 = arith.constant dense<0.000000e+00> : vector<8x8xf32>
    %61 = tpu.matmul %57, %60, %cst_26 {dimension_numbers = #tpu.dot_dimension_numbers<[1], [0], [0], [1], [0, 0, 1, 1], [], []>} : vector<8x8xf32>, vector<8x8xf32>, vector<8x8xf32> -> vector<8x8xf32>
    %cst_27 = arith.constant 0.353553385 : f32
    %62 = vector.broadcast %cst_27 : f32 to vector<8x8xf32>
    %63 = arith.mulf %61, %62 : vector<8x8xf32>
    %cst_28 = arith.constant -1.000000e+04 : f32
    %64 = vector.broadcast %cst_28 : f32 to vector<8x8xf32>
    %65 = arith.select %18, %63, %64 : vector<8x8xi1>, vector<8x8xf32>
    %cst_29 = arith.constant dense<0xFF800000> : vector<8xf32>
    %66 = vector.multi_reduction <maximumf>, %65, %cst_29 [1] : vector<8x8xf32> to vector<8xf32>
    %67 = vector.shape_cast %66 : vector<8xf32> to vector<8x1xf32>
    %68 = vector.broadcast %67 : vector<8x1xf32> to vector<8x8xf32>
    %69 = arith.subf %65, %68 : vector<8x8xf32>
    %70 = math.exp %69 : vector<8x8xf32>
    %cst_30 = arith.constant dense<0.000000e+00> : vector<8xf32>
    %71 = vector.multi_reduction <add>, %70, %cst_30 [1] : vector<8x8xf32> to vector<8xf32>
    %72 = vector.shape_cast %71 : vector<8xf32> to vector<8x1xf32>
    %73 = vector.broadcast %72 : vector<8x1xf32> to vector<8x8xf32>
    %74 = arith.divf %70, %73 : vector<8x8xf32>
    %cst_31 = arith.constant dense<0.000000e+00> : vector<8x8xf32>
    %75 = tpu.matmul %74, %59, %cst_31 {dimension_numbers = #tpu.dot_dimension_numbers<[1], [0], [0], [1], [0, 0, 1, 1], [], []>} : vector<8x8xf32>, vector<8x8xf32>, vector<8x8xf32> -> vector<8x8xf32>
    %76 = vector.extract_strided_slice %1 {offsets = [0, 24], sizes = [8, 8], strides = [1, 1]} : vector<8x32xf32> to vector<8x8xf32>
    %77 = vector.extract_strided_slice %3 {offsets = [0, 24], sizes = [8, 8], strides = [1, 1]} : vector<8x32xf32> to vector<8x8xf32>
    %78 = vector.extract_strided_slice %5 {offsets = [0, 24], sizes = [8, 8], strides = [1, 1]} : vector<8x32xf32> to vector<8x8xf32>
    %79 = tpu.transpose %77, [1, 0] : vector<8x8xf32> -> vector<8x8xf32>
    %cst_32 = arith.constant dense<0.000000e+00> : vector<8x8xf32>
    %80 = tpu.matmul %76, %79, %cst_32 {dimension_numbers = #tpu.dot_dimension_numbers<[1], [0], [0], [1], [0, 0, 1, 1], [], []>} : vector<8x8xf32>, vector<8x8xf32>, vector<8x8xf32> -> vector<8x8xf32>
    %cst_33 = arith.constant 0.353553385 : f32
    %81 = vector.broadcast %cst_33 : f32 to vector<8x8xf32>
    %82 = arith.mulf %80, %81 : vector<8x8xf32>
    %cst_34 = arith.constant -1.000000e+04 : f32
    %83 = vector.broadcast %cst_34 : f32 to vector<8x8xf32>
    %84 = arith.select %18, %82, %83 : vector<8x8xi1>, vector<8x8xf32>
    %cst_35 = arith.constant dense<0xFF800000> : vector<8xf32>
    %85 = vector.multi_reduction <maximumf>, %84, %cst_35 [1] : vector<8x8xf32> to vector<8xf32>
    %86 = vector.shape_cast %85 : vector<8xf32> to vector<8x1xf32>
    %87 = vector.broadcast %86 : vector<8x1xf32> to vector<8x8xf32>
    %88 = arith.subf %84, %87 : vector<8x8xf32>
    %89 = math.exp %88 : vector<8x8xf32>
    %cst_36 = arith.constant dense<0.000000e+00> : vector<8xf32>
    %90 = vector.multi_reduction <add>, %89, %cst_36 [1] : vector<8x8xf32> to vector<8xf32>
    %91 = vector.shape_cast %90 : vector<8xf32> to vector<8x1xf32>
    %92 = vector.broadcast %91 : vector<8x1xf32> to vector<8x8xf32>
    %93 = arith.divf %89, %92 : vector<8x8xf32>
    %cst_37 = arith.constant dense<0.000000e+00> : vector<8x8xf32>
    %94 = tpu.matmul %93, %78, %cst_37 {dimension_numbers = #tpu.dot_dimension_numbers<[1], [0], [0], [1], [0, 0, 1, 1], [], []>} : vector<8x8xf32>, vector<8x8xf32>, vector<8x8xf32> -> vector<8x8xf32>
    %95 = tpu.concatenate %37, %56, %75, %94 in 1 : vector<8x8xf32>, vector<8x8xf32>, vector<8x8xf32>, vector<8x8xf32> -> vector<8x32xf32>
    %c0_38 = arith.constant 0 : index
    %c0_39 = arith.constant 0 : index
    %c0_40 = arith.constant 0 : index
    %96 = vector.load %arg6[%c0_38, %c0_39, %c0_40] : memref<1x8x32xf32, #tpu.memory_space<vmem>>, vector<1x8x32xf32>
    %97 = vector.shape_cast %96 : vector<1x8x32xf32> to vector<8x32xf32>
    %98 = vector.shape_cast %95 : vector<8x32xf32> to vector<1x8x32xf32>
    tpu.vector_store %arg6[%c0_38, %c0_39, %c0_40], %98 {strides = array<i32>} : memref<1x8x32xf32, #tpu.memory_space<vmem>>, vector<1x8x32xf32>,
    return
  }
  func.func @transform_0(%arg0: i32) -> (i32, i32, i32) {
    %c0_i32 = arith.constant 0 : i32
    %c0_i32_0 = arith.constant 0 : i32
    %c0_i32_1 = arith.constant 0 : i32
    return %arg0, %c0_i32, %c0_i32_0 : i32, i32, i32
  }
  func.func @transform_1(%arg0: i32) -> (i32, i32, i32) {
    %c0_i32 = arith.constant 0 : i32
    %c0_i32_0 = arith.constant 0 : i32
    %c0_i32_1 = arith.constant 0 : i32
    return %arg0, %c0_i32, %c0_i32_0 : i32, i32, i32
  }
  func.func @transform_2(%arg0: i32) -> (i32, i32, i32) {
    %c0_i32 = arith.constant 0 : i32
    %c0_i32_0 = arith.constant 0 : i32
    %c0_i32_1 = arith.constant 0 : i32
    return %arg0, %c0_i32, %c0_i32_0 : i32, i32, i32
  }
  func.func @transform_3(%arg0: i32) -> (i32, i32, i32) {
    %c0_i32 = arith.constant 0 : i32
    %c0_i32_0 = arith.constant 0 : i32
    %c0_i32_1 = arith.constant 0 : i32
    return %arg0, %c0_i32, %c0_i32_0 : i32, i32, i32
  }
  func.func @transform_4(%arg0: i32) -> (i32, i32, i32) {
    %c0_i32 = arith.constant 0 : i32
    %c0_i32_0 = arith.constant 0 : i32
    %c0_i32_1 = arith.constant 0 : i32
    return %arg0, %c0_i32, %c0_i32_0 : i32, i32, i32
  }
  func.func @transform_5(%arg0: i32) -> (i32, i32, i32) {
    %c0_i32 = arith.constant 0 : i32
    %c0_i32_0 = arith.constant 0 : i32
    %c0_i32_1 = arith.constant 0 : i32
    return %arg0, %c0_i32, %c0_i32_0 : i32, i32, i32
  }
}

</mosaic_0001>

<bundles_post_ra>
// kernel: transformer_forward.37
= control target key start
LH: loop header
LB: loop body
LE: loop exit
PB: predicated region body
PF: predicated region fallthrough
CT: control target
= control target key end

     0   :  { %vm18_vm0 = vcmask 261120   ;;  %v164_v3 = vmov 0.0   ;;  %s220_s1 = inlined_call_operand.vmem [shape: f32[32,32], index: 1, kind: input, shape index: {}]   ;;  %s221_s0 = inlined_call_operand.vmem [shape: f32[16,32], index: 0, kind: input, shape index: {}]   ;;  %s222_s2 = inlined_call_operand.vmem [shape: f32[1,32], index: 2, kind: input, shape index: {}]   ;;  %s223_s3 = inlined_call_operand.vmem [shape: f32[16,32], index: 3, kind: output, shape index: {}]  }
   0x1   :  { %v25_v0 = vld [vmem:[%s220_s1] sm:$0xff]  ;;  %v26_v1 = vld [vmem:[%s220_s1 + $0x8] sm:$0xff]  ;;  %v27_v2 = vld [vmem:[%s220_s1 + $0x10] sm:$0xff]  ;;  %20 = vst.msk [vmem:[#allocation2 + $0x8] sm:$0xff] %vm18_vm0, %v164_v3 }
   0x2   :  { %19 = vst.msk [vmem:[#allocation2] sm:$0xff] %vm18_vm0, %v164_v3  ;;  %v155_v4 = vpack.c.bf16 %v26_v1, %v25_v0  ;;  %v28_v5 = vld [vmem:[%s220_s1 + $0x18] sm:$0xff]  ;;  %v23_v6 = vld [vmem:[%s221_s0] sm:$0xff]  ;;  %v24_v8 = vld [vmem:[%s221_s0 + $0x8] sm:$0xff] }
   0x3   :  { %v159_v7 = vpack.c.bf16 %v28_v5, %v27_v2  ;;  %152 = vmatprep.mubr.msk.f32.mxu0 %vm18_vm0, %v23_v6  ;;  %v137_v15 = vld [vmem:[%s222_s2] ss:$0 sm:$0xff] }
   0x4   :  { %156 = vmatprep.subr.bf16.mxu0 %v155_v4 }
   0x5   :  { %158 = vmatpush3.bf16.msra.mxu0 %v155_v4 }
   0x6   :  { %160 = vmatprep.subr.bf16.mxu0 %v159_v7 }
   0x8   :  { %v22_v9 = vld [vmem:[#allocation2 + $0x8] sm:$0xff] }
   0x9   :  { %162 = vmatpush3.bf16.msra.mxu0 %v159_v7  ;;  %v21_v10 = vld [vmem:[#allocation2] sm:$0xff] }
   0xc   :  { %153 = vmatmul.mubr.msk.f32.vlgmr.msra.gmra.mrb[0].mxu0 %vm18_vm0, %v24_v8 }
  0xdf   :  { %v154_v11 = vpop.f32.mrb[0].mxu0 }
  0xe0   :  { %v112_v12 = vadd.f32 %v154_v11, %v22_v9  ;;  %v102_v13 = vpop.f32.mrb[1].mxu0 }
  0xe1   :  { %v111_v14 = vadd.f32 %v102_v13, %v21_v10 }
  0xe2   :  { %114 = vst.msk [vmem:[#allocation2 + $0x8] sm:$0xff] %vm18_vm0, %v112_v12 }
  0xe3   :  { %113 = vst.msk [vmem:[#allocation2] sm:$0xff] %vm18_vm0, %v111_v14 }
  0xe9   :  { %v119_v16 = vld [vmem:[#allocation2 + $0x8] sm:$0xff] }
  0xea   :  { %v128_v17 = vadd.f32 %v137_v15, %v119_v16  ;;  %v118_v18 = vld [vmem:[#allocation2] sm:$0xff] }
  0xeb   :  { %v127_v19 = vadd.f32 %v137_v15, %v118_v18 }
  0xec   :  { %130 = vst.msk [vmem:[%s223_s3 + $0x8] sm:$0xff] %vm18_vm0, %v128_v17 }
  0xed   :  { %129 = vst.msk [vmem:[%s223_s3] sm:$0xff] %vm18_vm0, %v127_v19 }

// kernel: transformer_forward.38
= control target key start
LH: loop header
LB: loop body
LE: loop exit
PB: predicated region body
PF: predicated region fallthrough
CT: control target
= control target key end

     0   :  { %vm23_vm0 = vcmask 261120   ;;  %s136_s0 = inlined_call_operand.vmem [shape: f32[16,32], index: 0, kind: input, shape index: {}]   ;;  %s137_s1 = inlined_call_operand.vmem [shape: f32[16,32], index: 1, kind: input, shape index: {}]   ;;  %s138_s2 = inlined_call_operand.vmem [shape: f32[1,32], index: 2, kind: input, shape index: {}]   ;;  %s139_s3 = inlined_call_operand.vmem [shape: f32[1,32], index: 3, kind: input, shape index: {}]   ;;  %s140_s4 = inlined_call_operand.vmem [shape: f32[16,32], index: 4, kind: output, shape index: {}]  }
   0x1   :  { %v17_v0 = vld [vmem:[%s136_s0] sm:$0xff]  ;;  %v18_v2 = vld [vmem:[%s136_s0 + $0x8] sm:$0xff] }
   0x2   :  { %v19_v1 = vld [vmem:[%s137_s1] sm:$0xff]  ;;  %v20_v4 = vld [vmem:[%s137_s1 + $0x8] sm:$0xff] }
   0x3   :  { %v21_v3 = vadd.f32 %v19_v1, %v17_v0  ;;  %v22_v5 = vadd.f32 %v20_v4, %v18_v2  ;;  %v75_v25 = vld [vmem:[%s138_s2] ss:$0 sm:$0xff] }
   0x4   :  { %v76_v27 = vld [vmem:[%s139_s3] ss:$0 sm:$0xff] }
   0x5   :  { %v24_v6 = vsel %vm23_vm0, %v21_v3, 0.0  ;;  %v27_v7 = vsel %vm23_vm0, %v22_v5, 0.0 }
   0x6   :  { %25 = vadd.xlane.f32.xlu0 %v24_v6 }
   0xa   :  { %28 = vadd.xlane.f32.xlu0 %v27_v7 }
  0x93   :  { %v26_v8 = vpop.xlane.xlu0 %25 }
  0x94   :  { %v31_v9 = vmul.f32 0.03125, %v26_v8 }
  0x96   :  { %v33_v10 = vsub.f32 %v21_v3, %v31_v9 }
  0x97   :  { %v29_v11 = vpop.xlane.xlu0 %28 }
  0x98   :  { %v32_v12 = vmul.f32 0.03125, %v29_v11  ;;  %v35_v13 = vmul.f32 %v33_v10, %v33_v10 }
  0x9a   :  { %v34_v14 = vsub.f32 %v22_v5, %v32_v12  ;;  %v37_v15 = vsel %vm23_vm0, %v35_v13, 0.0 }
  0x9b   :  { %38 = vadd.xlane.f32.xlu1 %v37_v15 }
  0x9c   :  { %v36_v16 = vmul.f32 %v34_v14, %v34_v14 }
  0x9e   :  { %v40_v17 = vsel %vm23_vm0, %v36_v16, 0.0 }
  0x9f   :  { %41 = vadd.xlane.f32.xlu1 %v40_v17 }
 0x128   :  { %v39_v18 = vpop.xlane.xlu1 %38 }
 0x129   :  { %v43_v19 = vmul.f32 0.03125, %v39_v18 }
 0x12b   :  { %v45_v20 = vadd.f32 1e-12, %v43_v19 }
 0x12c   :  { %v42_v21 = vpop.xlane.xlu1 %41 }
 0x12d   :  { %77 = vrsqrt.f32 %v45_v20  ;;  %v44_v22 = vmul.f32 0.03125, %v42_v21 }
 0x12f   :  { %v46_v23 = vadd.f32 1e-12, %v44_v22 }
 0x131   :  { %79 = vrsqrt.f32 %v46_v23 }
 0x137   :  { %v78_v24 = vpop.eup %77 }
 0x138   :  { %v49_v26 = vmul.f32 %v78_v24, %v33_v10 }
 0x13a   :  { %v58_v28 = vmul.f32 %v75_v25, %v49_v26 }
 0x13b   :  { %v80_v29 = vpop.eup %79 }
 0x13c   :  { %v67_v30 = vadd.f32 %v76_v27, %v58_v28  ;;  %v50_v31 = vmul.f32 %v80_v29, %v34_v14 }
 0x13e   :  { %69 = vst.msk [vmem:[%s140_s4] sm:$0xff] %vm23_vm0, %v67_v30  ;;  %v59_v32 = vmul.f32 %v75_v25, %v50_v31 }
 0x140   :  { %v68_v33 = vadd.f32 %v76_v27, %v59_v32 }
 0x142   :  { %70 = vst.msk [vmem:[%s140_s4 + $0x8] sm:$0xff] %vm23_vm0, %v68_v33 }

// kernel: transformer_forward.35
= control target key start
LH: loop header
LB: loop body
LE: loop exit
PB: predicated region body
PF: predicated region fallthrough
CT: control target
= control target key end

     0   :  { %vm29_vm0 = vcmask 261120   ;;  %vm18_vm1 = vcmask 785408   ;;  %v165_v3 = vmov 0.0   ;;  %s221_s1 = inlined_call_operand.vmem [shape: f32[32,96], index: 1, kind: input, shape index: {}]   ;;  %s222_s0 = inlined_call_operand.vmem [shape: f32[16,32], index: 0, kind: input, shape index: {}]   ;;  %s223_s2 = inlined_call_operand.vmem [shape: f32[1,96], index: 2, kind: input, shape index: {}]   ;;  %s224_s3 = inlined_call_operand.vmem [shape: f32[16,96], index: 3, kind: output, shape index: {}]  }
   0x1   :  { %v25_v0 = vld [vmem:[%s221_s1] sm:$0xff]  ;;  %v26_v1 = vld [vmem:[%s221_s1 + $0x8] sm:$0xff]  ;;  %v27_v2 = vld [vmem:[%s221_s1 + $0x10] sm:$0xff]  ;;  %20 = vst.msk [vmem:[#allocation2 + $0x8] sm:$0xff] %vm18_vm1, %v165_v3 }
   0x2   :  { %19 = vst.msk [vmem:[#allocation2] sm:$0xff] %vm18_vm1, %v165_v3  ;;  %v156_v4 = vpack.c.bf16 %v26_v1, %v25_v0  ;;  %v28_v5 = vld [vmem:[%s221_s1 + $0x18] sm:$0xff]  ;;  %v23_v6 = vld [vmem:[%s222_s0] sm:$0xff]  ;;  %v24_v8 = vld [vmem:[%s222_s0 + $0x8] sm:$0xff] }
   0x3   :  { %v160_v7 = vpack.c.bf16 %v28_v5, %v27_v2  ;;  %153 = vmatprep.mubr.msk.f32.mxu0 %vm29_vm0, %v23_v6  ;;  %v138_v15 = vld [vmem:[%s223_s2] ss:$0 sm:$0xff] }
   0x4   :  { %157 = vmatprep.subr.bf16.mxu0 %v156_v4 }
   0x5   :  { %159 = vmatpush3.bf16.msra.mxu0 %v156_v4 }
   0x6   :  { %161 = vmatprep.subr.bf16.mxu0 %v160_v7 }
   0x8   :  { %v22_v9 = vld [vmem:[#allocation2 + $0x8] sm:$0xff] }
   0x9   :  { %163 = vmatpush3.bf16.msra.mxu0 %v160_v7  ;;  %v21_v10 = vld [vmem:[#allocation2] sm:$0xff] }
   0xc   :  { %154 = vmatmul.mubr.msk.f32.vlgmr.msra.gmra.mrb[0].mxu0 %vm29_vm0, %v24_v8 }
  0xdf   :  { %v155_v11 = vpop.f32.mrb[0].mxu0 }
  0xe0   :  { %v112_v12 = vadd.f32 %v155_v11, %v22_v9  ;;  %v102_v13 = vpop.f32.mrb[1].mxu0 }
  0xe1   :  { %v111_v14 = vadd.f32 %v102_v13, %v21_v10 }
  0xe2   :  { %115 = vst.msk [vmem:[#allocation2 + $0x8] sm:$0xff] %vm18_vm1, %v112_v12 }
  0xe3   :  { %114 = vst.msk [vmem:[#allocation2] sm:$0xff] %vm18_vm1, %v111_v14 }
  0xe9   :  { %v120_v16 = vld [vmem:[#allocation2 + $0x8] sm:$0xff] }
  0xea   :  { %v129_v17 = vadd.f32 %v138_v15, %v120_v16  ;;  %v119_v18 = vld [vmem:[#allocation2] sm:$0xff] }
  0xeb   :  { %v128_v19 = vadd.f32 %v138_v15, %v119_v18 }
  0xec   :  { %131 = vst.msk [vmem:[%s224_s3 + $0x8] sm:$0xff] %vm18_vm1, %v129_v17 }
  0xed   :  { %130 = vst.msk [vmem:[%s224_s3] sm:$0xff] %vm18_vm1, %v128_v19 }

// kernel: transformer_forward.36
= control target key start
LH: loop header
LB: loop body
LE: loop exit
PB: predicated region body
PF: predicated region fallthrough
CT: control target
= control target key end

     0   :  { %s1247_s18 = smov 0   ;;  %s1350_s0 = inlined_call_operand.vmem [shape: f32[2,8,32], index: 0, kind: input, shape index: {}]   ;;  %s1351_s1 = inlined_call_operand.vmem [shape: f32[2,8,32], index: 1, kind: input, shape index: {}]   ;;  %s1352_s2 = inlined_call_operand.vmem [shape: f32[2,8,32], index: 2, kind: input, shape index: {}]   ;;  %s1353_s3 = inlined_call_operand.vmem [shape: f32[2,8,1], index: 3, kind: input, shape index: {}]   ;;  %s1354_s4 = inlined_call_operand.vmem [shape: f32[2,1,8], index: 4, kind: input, shape index: {}]   ;;  %s1355_s5 = inlined_call_operand.vmem [shape: f32[2,8,32], index: 5, kind: output, shape index: {}]  }
   0x1 LB: > { %s1085_s19 = sadd.s32 4294967295, %s1206_s18   ;;  %p1089_p0 = scmp.ge.s32.totalorder %s1206_s18, 1  ;;  %s1206_s18 = sphi %s1247_s18, %s15_s18  }
   0x2   : > { %p221_p1 = scmp.lt.s32.totalorder %s1206_s18, 3 }
   0x4   : > { %p222_p2 = pnand %p1089_p0, %p221_p1 }
   0x5   : > { %p262_p3 = scmp.lt.s32.totalorder (!%p222_p2), %s1085_s19, 1  ;;  %v1208_v0 = vmov (!%p222_p2), 0.0   ;;  %vm1209_vm0 = vmmov (!%p222_p2), 0   ;;  %v1210_v1 = vmov (!%p222_p2), 0   ;;  %vm303_vm1 = vcmask (!%p222_p2), 64512   ;;  %s1211_s30 = smov (!%p222_p2), 120  }
   0x6   : > { %225 = sbr.rel (%p222_p2) target bundleno = 1419 (0x58b), region = 40  ;;  %1126 = vmatprep.subr.mxu0 (!%p222_p2), %v1208_v0  ;;  %1128 = vmatprep.mubr.msk.f32.mxu0 (!%p222_p2), %vm1209_vm0, %v1208_v0  ;;  %s1212_s6 = smov (!%p222_p2), 112   ;;  %vm981_vm3 = vcmask (!%p222_p2), 130048   ;;  %vm983_vm4 = vcmask (!%p222_p2), 195584   ;;  %vm985_vm5 = vcmask (!%p222_p2), 261120  }
   0x7   : > { %1183 = vset.pattern.permute.xlu0 (!%p222_p2), %v1210_v1  ;;  %1131 = vmatprep.subr.mxu1 (!%p222_p2), %v1208_v0  ;;  %s1213_s10 = smov (!%p222_p2), 104   ;;  %s1214_s14 = smov (!%p222_p2), 8  }
   0x8   : > { %1133 = vmatprep.mubr.msk.f32.mxu1 (!%p222_p2), %vm1209_vm0, %v1208_v0  ;;  %s1215_s15 = smov (!%p222_p2), 16   ;;  %s1216_s16 = smov (!%p222_p2), 24  }
   0xd   : > { %s1357_s19 = smov (!%p262_p3, %s1085_s19), 1 }
   0xe   : > { %s1261_s20 = sshll.u32 %s1357_s19, 3  ;;  %s280_s9 = scalar_lea.vmem %s1354_s4, %s1357_s19 }
   0xf   : > { %s269_s23 = scalar_lea.vmem %s1351_s1, %s1261_s20  ;;  %s265_s26 = scalar_lea.vmem %s1350_s0, %s1261_s20  ;;  %v1095_v5 = vld [vmem:[%s280_s9] ss:$0 sm:$0xff] }
  0x10   : > { %v286_v2 = vld [vmem:[%s269_s23] sm:$0xff]  ;;  %s277_s29 = scalar_lea.vmem %s1353_s3, %s1261_s20  ;;  %s273_s13 = scalar_lea.vmem %s1352_s2, %s1261_s20 }
  0x11   : > { %1127 = vmatpush3.xpose.msk.msra.mxu0 %vm303_vm1, %v286_v2  ;;  %v285_v3 = vld [vmem:[%s265_s26] sm:$0xff]  ;;  %468 = vrot.lane.b32.xlu1 %v286_v2, %s1211_s30  ;;  %s284_s21 = scalar_lea.vmem %s1355_s5, %s1261_s20 }
  0x12   : > { %v288_v4 = vld [vmem:[%s277_s29] sm:$0xff]  ;;  %1141 = vmatprep.subr.mxu0 %v1208_v0 }
  0x13   : > { %292 = vperm.xlu0 %1183, %v288_v4   ;;  %v1295_v18 = vld [vmem:[%s273_s13] sm:$0xff] }
  0x14   : > { %1129 = vmatmul.mubr.msk.f32.vlgmr.msra.gmra.mrb[0].mxu0 %vm303_vm1, %v285_v3  ;;  %1132 = vmatpush3.msra.mxu1 %v1295_v18 }
  0x15   : > { %1143 = vmatprep.mubr.msk.f32.mxu0 %vm1209_vm0, %v1208_v0  ;;  %466 = vrot.lane.b32.xlu1 %v285_v3, %s1211_s30 }
  0x16   : > { %1136 = vmatprep.subr.mxu1 %v1208_v0 }
  0x19   : > { %636 = vrot.lane.b32.xlu1 %v286_v2, %s1212_s6 }
  0x1d   : > { %634 = vrot.lane.b32.xlu1 %v285_v3, %s1212_s6 }
  0x83   : > { %v469_v19 = vpop.permute.xlu1 %468 }
  0x87   : > { %v467_v20 = vpop.permute.xlu1 %466 }
  0x8b   : > { %v637_v21 = vpop.permute.xlu1 %636 }
  0x8f   : > { %v635_v22 = vpop.permute.xlu1 %634 }
  0x92   : > { %v293_v6 = vpop.permute.xlu0 %292 }
  0x93   : > { %v301_v7 = vmul.f32 %v1095_v5, %v293_v6 }
  0x95   : > { %vm302_vm2 = vcmp.gt.f32.partialorder %v301_v7, 0.5 }
  0xe7   : > { %v376_v8 = vpop.f32.mrb[0].mxu0 }
  0xe8   : > { %v380_v9 = vmul.f32 0.35355338, %v376_v8  ;;  %v1130_v10 = vpop.f32.mrb[1].mxu0 }
  0xea   : > { %v381_v11 = vsel %vm302_vm2, %v380_v9, -10000.0 }
  0xeb   : > { %v382_v12 = vsel %vm303_vm1, %v381_v11, -inf }
  0xec   : > { %383 = vmax.xlane.f32.xlu0 %v382_v12 }
 0x102   : > { %801 = vrot.lane.b32.xlu0 %v285_v3, %s1213_s10 }
 0x179   : > { %v384_v13 = vpop.xlane.xlu0 %383 }
 0x17a   : > { %v385_v14 = vsub.f32 %v381_v11, %v384_v13 }
 0x17c   : > { %v386_v15 = vmul.f32 1.442695, %v385_v14 }
 0x17d   : > { %v802_v27 = vpop.permute.xlu0 %801 }
 0x17e   : > { %1184 = vpow2.f32 %v386_v15 }
 0x188   : > { %v1185_v16 = vpop.eup %1184 }
 0x189   : > { %v388_v17 = vsel %vm303_vm1, %v1185_v16, 0.0 }
 0x18a   : > { %389 = vadd.xlane.f32.xlu1 %v388_v17 }
 0x19b   : > { %803 = vrot.lane.b32.xlu1 %v286_v2, %s1213_s10 }
 0x217   : > { %v390_v23 = vpop.xlane.xlu1 %389 }
 0x218   : > { %1186 = vrcp.f32 %v390_v23 }
 0x21b   : > { %v804_v26 = vpop.permute.xlu1 %803 }
 0x222   : > { %v1187_v24 = vpop.eup %1186 }
 0x223   : > { %v392_v25 = vmul.f32 %v1187_v24, %v1185_v16 }
 0x225   : > { %1134 = vmatmul.mubr.msk.f32.vlgmr.msra.gmra.mrb[0].mxu1 %vm303_vm1, %v392_v25 }
 0x226   : > { %1137 = vmatpush3.xpose.msk.msra.mxu1 %vm303_vm1, %v469_v19  ;;  %1138 = vmatprep.mubr.msk.f32.mxu1 %vm1209_vm0, %v1208_v0 }
 0x227   : > { %1146 = vmatprep.subr.mxu1 %v1208_v0 }
 0x229   : > { %1139 = vmatmul.mubr.msk.f32.vlgmr.msra.gmra.mrb[2].mxu1 %vm303_vm1, %v467_v20 }
 0x22a   : > { %1147 = vmatpush3.xpose.msk.msra.mxu1 %vm303_vm1, %v637_v21  ;;  %1148 = vmatprep.mubr.msk.f32.mxu1 %vm1209_vm0, %v1208_v0 }
 0x22b   : > { %1156 = vmatprep.subr.mxu1 %v1208_v0 }
 0x22d   : > { %1149 = vmatmul.mubr.msk.f32.vlgmr.msra.gmra.mrb[4].mxu1 %vm303_vm1, %v635_v22 }
 0x22e   : > { %1157 = vmatpush3.xpose.msk.msra.mxu1 %vm303_vm1, %v804_v26  ;;  %1158 = vmatprep.mubr.msk.f32.mxu1 %vm1209_vm0, %v1208_v0 }
 0x231   : > { %1159 = vmatmul.mubr.msk.f32.vlgmr.msra.gmra.mrb[6].mxu1 %vm303_vm1, %v802_v27 }
 0x2f8   : > { %v1315_v28 = vpop.f32.mrb[0].mxu1 }
 0x2f9   : > { %v1135_v29 = vpop.f32.mrb[1].mxu1 }
 0x2fc   : > { %v540_v30 = vpop.f32.mrb[2].mxu1 }
 0x2fd   : > { %v544_v31 = vmul.f32 0.35355338, %v540_v30  ;;  %v1140_v32 = vpop.f32.mrb[3].mxu1 }
 0x2ff   : > { %v545_v33 = vsel %vm302_vm2, %v544_v31, -10000.0 }
 0x300   : > { %v708_v34 = vpop.f32.mrb[4].mxu1  ;;  %v546_v35 = vsel %vm303_vm1, %v545_v33, -inf }
 0x301   : > { %v712_v36 = vmul.f32 0.35355338, %v708_v34  ;;  %547 = vmax.xlane.f32.xlu1 %v546_v35  ;;  %v1150_v37 = vpop.f32.mrb[5].mxu1 }
 0x303   : > { %v713_v38 = vsel %vm302_vm2, %v712_v36, -10000.0 }
 0x304   : > { %v875_v39 = vpop.f32.mrb[6].mxu1  ;;  %v714_v40 = vsel %vm303_vm1, %v713_v38, -inf }
 0x305   : > { %v879_v41 = vmul.f32 0.35355338, %v875_v39  ;;  %715 = vmax.xlane.f32.xlu0 %v714_v40  ;;  %v1160_v42 = vpop.f32.mrb[7].mxu1 }
 0x307   : > { %v880_v43 = vsel %vm302_vm2, %v879_v41, -10000.0 }
 0x308   : > { %v881_v44 = vsel %vm303_vm1, %v880_v43, -inf }
 0x309   : > { %882 = vmax.xlane.f32.xlu1 %v881_v44 }
 0x31a   : > { %725 = vrot.lane.b32.xlu1 %v1295_v18, %s1212_s6 }
 0x31b   : > { %558 = vrot.lane.b32.xlu0 %v1295_v18, %s1211_s30 }
 0x38e   : > { %v548_v45 = vpop.xlane.xlu1 %547 }
 0x38f   : > { %v549_v46 = vsub.f32 %v545_v33, %v548_v45 }
 0x391   : > { %v550_v47 = vmul.f32 1.442695, %v549_v46 }
 0x392   : > { %v716_v48 = vpop.xlane.xlu0 %715 }
 0x393   : > { %1188 = vpow2.f32 %v550_v47  ;;  %v717_v49 = vsub.f32 %v713_v38, %v716_v48 }
 0x395   : > { %v718_v50 = vmul.f32 1.442695, %v717_v49 }
 0x396   : > { %v883_v51 = vpop.xlane.xlu1 %882  ;;  %v559_v60 = vpop.permute.xlu0 %558 }
 0x397   : > { %1190 = vpow2.f32 %v718_v50  ;;  %v884_v52 = vsub.f32 %v880_v43, %v883_v51  ;;  %1142 = vmatpush3.msra.mxu0 %v559_v60 }
 0x398   : > { %1151 = vmatprep.subr.mxu0 %v1208_v0 }
 0x399   : > { %v885_v53 = vmul.f32 1.442695, %v884_v52 }
 0x39a   : > { %v726_v61 = vpop.permute.xlu1 %725 }
 0x39b   : > { %1192 = vpow2.f32 %v885_v53 }
 0x39d   : > { %v1189_v54 = vpop.eup %1188 }
 0x39e   : > { %v552_v55 = vsel %vm303_vm1, %v1189_v54, 0.0 }
 0x39f   : > { %553 = vadd.xlane.f32.xlu1 %v552_v55 }
 0x3a1   : > { %v1191_v56 = vpop.eup %1190 }
 0x3a2   : > { %v720_v57 = vsel %vm303_vm1, %v1191_v56, 0.0 }
 0x3a3   : > { %721 = vadd.xlane.f32.xlu1 %v720_v57 }
 0x3a5   : > { %v1193_v58 = vpop.eup %1192 }
 0x3a6   : > { %v887_v59 = vsel %vm303_vm1, %v1193_v58, 0.0 }
 0x3a7   : > { %888 = vadd.xlane.f32.xlu1 %v887_v59 }
 0x3b8   : > { %892 = vrot.lane.b32.xlu1 %v1295_v18, %s1213_s10 }
 0x42c   : > { %v554_v62 = vpop.xlane.xlu1 %553 }
 0x42d   : > { %1194 = vrcp.f32 %v554_v62 }
 0x430   : > { %v722_v63 = vpop.xlane.xlu1 %721 }
 0x431   : > { %1196 = vrcp.f32 %v722_v63 }
 0x434   : > { %v889_v1 = vpop.xlane.xlu1 %888 }
 0x435   : > { %1198 = vrcp.f32 %v889_v1 }
 0x437   : > { %v1195_v2 = vpop.eup %1194 }
 0x438   : > { %v556_v3 = vmul.f32 %v1195_v2, %v1189_v54  ;;  %v893_v6 = vpop.permute.xlu1 %892 }
 0x43a   : > { %1144 = vmatmul.mubr.msk.f32.vlgmr.msra.gmra.mrb[2].mxu0 %vm303_vm1, %v556_v3 }
 0x43b   : > { %v1197_v4 = vpop.eup %1196  ;;  %1152 = vmatpush3.msra.mxu0 %v726_v61  ;;  %1153 = vmatprep.mubr.msk.f32.mxu0 %vm1209_vm0, %v1208_v0 }
 0x43c   : > { %v724_v5 = vmul.f32 %v1197_v4, %v1191_v56  ;;  %1161 = vmatprep.subr.mxu0 %v1208_v0 }
 0x43e   : > { %1154 = vmatmul.mubr.msk.f32.vlgmr.msra.gmra.mrb[4].mxu0 %vm303_vm1, %v724_v5 }
 0x43f   : > { %v1199_v7 = vpop.eup %1198  ;;  %1162 = vmatpush3.msra.mxu0 %v893_v6  ;;  %1163 = vmatprep.mubr.msk.f32.mxu0 %vm1209_vm0, %v1208_v0 }
 0x440   : > { %v891_v8 = vmul.f32 %v1199_v7, %v1193_v58 }
 0x442   : > { %1164 = vmatmul.mubr.msk.f32.vlgmr.msra.gmra.mrb[6].mxu0 %vm303_vm1, %v891_v8 }
 0x50d   : > { %v630_v9 = vpop.f32.mrb[2].mxu0 }
 0x50e   : > { %969 = vrot.lane.b32.xlu0 %v630_v9, %s1214_s14  ;;  %v1145_v10 = vpop.f32.mrb[3].mxu0 }
 0x511   : > { %v797_v11 = vpop.f32.mrb[4].mxu0 }
 0x512   : > { %973 = vrot.lane.b32.xlu1 %v797_v11, %s1215_s15  ;;  %v1155_v12 = vpop.f32.mrb[5].mxu0 }
 0x515   : > { %v964_v13 = vpop.f32.mrb[6].mxu0 }
 0x516   : > { %977 = vrot.lane.b32.xlu0 %v964_v13, %s1216_s16  ;;  %v1165_v14 = vpop.f32.mrb[7].mxu0 }
 0x580   : > { %v970_v15 = vpop.permute.xlu0 %969 }
 0x581   : > { %v980_v0 = vsel %vm303_vm1, %v1315_v28, %v970_v15 }
 0x584   : > { %v974_v16 = vpop.permute.xlu1 %973 }
 0x585   : > { %v982_v17 = vsel %vm981_vm3, %v980_v0, %v974_v16 }
 0x588   : > { %v978_v18 = vpop.permute.xlu0 %977 }
 0x589   : > { %v984_v19 = vsel %vm983_vm4, %v982_v17, %v978_v18 }
 0x58a   : > { %986 = vst.msk [vmem:[%s284_s21] sm:$0xff] %vm985_vm5, %v984_v19 }
 0x58b PF: > { %s15_s18 = sadd.s32 1, %s1206_s18  }
 0x58c   : > { %p12_p4 = scmp.ge.s32.totalorder %s15_s18, 4  }
 0x58e   :  { %14 = sbr.rel (!%p12_p4) target bundleno = 1 (0x1), region = 82 }

// kernel: transformer_forward.39
= control target key start
LH: loop header
LB: loop body
LE: loop exit
PB: predicated region body
PF: predicated region fallthrough
CT: control target
= control target key end

     0   :  { %vm33_vm0 = vcmask 261120   ;;  %vm132_vm1 = vcmask 523264   ;;  %s384_s1 = inlined_call_operand.vmem [shape: f32[32,64], index: 1, kind: input, shape index: {}]   ;;  %s385_s0 = inlined_call_operand.vmem [shape: f32[16,32], index: 0, kind: input, shape index: {}]   ;;  %s386_s3 = inlined_call_operand.vmem [shape: f32[64,32], index: 3, kind: input, shape index: {}]   ;;  %s387_s2 = inlined_call_operand.vmem [shape: f32[1,64], index: 2, kind: input, shape index: {}]   ;;  %s388_s4 = inlined_call_operand.vmem [shape: f32[1,32], index: 4, kind: input, shape index: {}]   ;;  %s389_s5 = inlined_call_operand.vmem [shape: f32[16,32], index: 5, kind: output, shape index: {}]  }
   0x1   :  { %v22_v0 = vld [vmem:[%s384_s1] sm:$0xff]  ;;  %v23_v1 = vld [vmem:[%s384_s1 + $0x8] sm:$0xff]  ;;  %v24_v2 = vld [vmem:[%s384_s1 + $0x10] sm:$0xff] }
   0x2   :  { %v272_v3 = vpack.c.bf16 %v23_v1, %v22_v0  ;;  %v25_v4 = vld [vmem:[%s384_s1 + $0x18] sm:$0xff]  ;;  %v20_v5 = vld [vmem:[%s385_s0] sm:$0xff]  ;;  %v118_v8 = vld [vmem:[%s386_s3 + $0x8] sm:$0xff] }
   0x3   :  { %v276_v6 = vpack.c.bf16 %v25_v4, %v24_v2  ;;  %250 = vmatprep.mubr.msk.f32.mxu0 %vm33_vm0, %v20_v5  ;;  %v117_v7 = vld [vmem:[%s386_s3] sm:$0xff]  ;;  %v119_v9 = vld [vmem:[%s386_s3 + $0x10] sm:$0xff]  ;;  %v120_v11 = vld [vmem:[%s386_s3 + $0x18] sm:$0xff] }
   0x4   :  { %273 = vmatprep.subr.bf16.mxu0 %v272_v3  ;;  %v280_v10 = vpack.c.bf16 %v118_v8, %v117_v7  ;;  %v284_v12 = vpack.c.bf16 %v120_v11, %v119_v9  ;;  %v121_v13 = vld [vmem:[%s386_s3 + $0x20] sm:$0xff]  ;;  %v122_v14 = vld [vmem:[%s386_s3 + $0x28] sm:$0xff]  ;;  %v123_v17 = vld [vmem:[%s386_s3 + $0x30] sm:$0xff] }
   0x5   :  { %275 = vmatpush3.bf16.msra.mxu0 %v272_v3  ;;  %v288_v15 = vpack.c.bf16 %v122_v14, %v121_v13  ;;  %v21_v16 = vld [vmem:[%s385_s0 + $0x8] sm:$0xff]  ;;  %v124_v18 = vld [vmem:[%s386_s3 + $0x38] sm:$0xff]  ;;  %v220_v20 = vld [vmem:[%s387_s2] ss:$0 sm:$0xff] }
   0x6   :  { %277 = vmatprep.subr.bf16.mxu0 %v276_v6  ;;  %281 = vmatprep.subr.bf16.mxu1 %v280_v10  ;;  %v292_v19 = vpack.c.bf16 %v124_v18, %v123_v17  ;;  %v223_v27 = vld [vmem:[%s388_s4] ss:$0 sm:$0xff] }
   0x7   :  { %283 = vmatpush3.bf16.msra.mxu1 %v280_v10 }
   0x8   :  { %285 = vmatprep.subr.bf16.mxu1 %v284_v12 }
   0x9   :  { %279 = vmatpush3.bf16.msra.mxu0 %v276_v6 }
   0xb   :  { %287 = vmatpush3.bf16.msra.mxu1 %v284_v12 }
   0xc   :  { %251 = vmatmul.mubr.msk.f32.vlgmr.msra.gmra.mrb[0].mxu0 %vm33_vm0, %v21_v16  ;;  %289 = vmatprep.subr.bf16.mxu1 %v288_v15 }
   0xf   :  { %291 = vmatpush3.bf16.msra.mxu1 %v288_v15 }
  0x10   :  { %293 = vmatprep.subr.bf16.mxu1 %v292_v19 }
  0x13   :  { %295 = vmatpush3.bf16.msra.mxu1 %v292_v19 }
  0xdf   :  { %v252_v21 = vpop.f32.mrb[0].mxu0 }
  0xe0   :  { %v112_v22 = vadd.f32 %v252_v21, %v220_v20  ;;  %v106_v23 = vpop.f32.mrb[1].mxu0 }
  0xe1   :  { %v107_v24 = vadd.f32 %v220_v20, %v106_v23 }
  0xe2   :  { %v116_v26 = vmax.f32 %v112_v22, 0.0 }
  0xe3   :  { %v115_v25 = vmax.f32 %v107_v24, 0.0 }
  0xe5   :  { %269 = vmatprep.mubr.msk.f32.mxu1 %vm132_vm1, %v115_v25 }
  0xe6   :  { %270 = vmatmul.mubr.msk.f32.vlgmr.msra.gmra.mrb[0].mxu1 %vm132_vm1, %v116_v26 }
 0x1b9   :  { %v271_v28 = vpop.f32.mrb[0].mxu1 }
 0x1ba   :  { %v211_v29 = vadd.f32 %v271_v28, %v223_v27  ;;  %v205_v30 = vpop.f32.mrb[1].mxu1 }
 0x1bb   :  { %v206_v31 = vadd.f32 %v223_v27, %v205_v30 }
 0x1bc   :  { %215 = vst.msk [vmem:[%s389_s5 + $0x8] sm:$0xff] %vm33_vm0, %v211_v29 }
 0x1bd   :  { %214 = vst.msk [vmem:[%s389_s5] sm:$0xff] %vm33_vm0, %v206_v31 }

// kernel: transformer_forward.52
= control target key start
LH: loop header
LB: loop body
LE: loop exit
PB: predicated region body
PF: predicated region fallthrough
CT: control target
= control target key end

     0   :  { %vm29_vm0 = vcmask 261120   ;;  %vm18_vm1 = vcmask 523264   ;;  %v165_v3 = vmov 0.0   ;;  %s221_s1 = inlined_call_operand.vmem [shape: f32[32,64], index: 1, kind: input, shape index: {}]   ;;  %s222_s0 = inlined_call_operand.vmem [shape: f32[16,32], index: 0, kind: input, shape index: {}]   ;;  %s223_s2 = inlined_call_operand.vmem [shape: f32[1,64], index: 2, kind: input, shape index: {}]   ;;  %s224_s3 = inlined_call_operand.vmem [shape: f32[16,64], index: 3, kind: output, shape index: {}]  }
   0x1   :  { %v25_v0 = vld [vmem:[%s221_s1] sm:$0xff]  ;;  %v26_v1 = vld [vmem:[%s221_s1 + $0x8] sm:$0xff]  ;;  %v27_v2 = vld [vmem:[%s221_s1 + $0x10] sm:$0xff]  ;;  %20 = vst.msk [vmem:[#allocation2 + $0x8] sm:$0xff] %vm18_vm1, %v165_v3 }
   0x2   :  { %19 = vst.msk [vmem:[#allocation2] sm:$0xff] %vm18_vm1, %v165_v3  ;;  %v156_v4 = vpack.c.bf16 %v26_v1, %v25_v0  ;;  %v28_v5 = vld [vmem:[%s221_s1 + $0x18] sm:$0xff]  ;;  %v23_v6 = vld [vmem:[%s222_s0] sm:$0xff]  ;;  %v24_v8 = vld [vmem:[%s222_s0 + $0x8] sm:$0xff] }
   0x3   :  { %v160_v7 = vpack.c.bf16 %v28_v5, %v27_v2  ;;  %153 = vmatprep.mubr.msk.f32.mxu0 %vm29_vm0, %v23_v6  ;;  %v138_v15 = vld [vmem:[%s223_s2] ss:$0 sm:$0xff] }
   0x4   :  { %157 = vmatprep.subr.bf16.mxu0 %v156_v4 }
   0x5   :  { %159 = vmatpush3.bf16.msra.mxu0 %v156_v4 }
   0x6   :  { %161 = vmatprep.subr.bf16.mxu0 %v160_v7 }
   0x8   :  { %v22_v9 = vld [vmem:[#allocation2 + $0x8] sm:$0xff] }
   0x9   :  { %163 = vmatpush3.bf16.msra.mxu0 %v160_v7  ;;  %v21_v10 = vld [vmem:[#allocation2] sm:$0xff] }
   0xc   :  { %154 = vmatmul.mubr.msk.f32.vlgmr.msra.gmra.mrb[0].mxu0 %vm29_vm0, %v24_v8 }
  0xdf   :  { %v155_v11 = vpop.f32.mrb[0].mxu0 }
  0xe0   :  { %v112_v12 = vadd.f32 %v155_v11, %v22_v9  ;;  %v102_v13 = vpop.f32.mrb[1].mxu0 }
  0xe1   :  { %v111_v14 = vadd.f32 %v102_v13, %v21_v10 }
  0xe2   :  { %115 = vst.msk [vmem:[#allocation2 + $0x8] sm:$0xff] %vm18_vm1, %v112_v12 }
  0xe3   :  { %114 = vst.msk [vmem:[#allocation2] sm:$0xff] %vm18_vm1, %v111_v14 }
  0xe9   :  { %v120_v16 = vld [vmem:[#allocation2 + $0x8] sm:$0xff] }
  0xea   :  { %v129_v17 = vadd.f32 %v138_v15, %v120_v16  ;;  %v119_v18 = vld [vmem:[#allocation2] sm:$0xff] }
  0xeb   :  { %v128_v19 = vadd.f32 %v138_v15, %v119_v18 }
  0xec   :  { %131 = vst.msk [vmem:[%s224_s3 + $0x8] sm:$0xff] %vm18_vm1, %v129_v17 }
  0xed   :  { %130 = vst.msk [vmem:[%s224_s3] sm:$0xff] %vm18_vm1, %v128_v19 }

// kernel: transformer_forward.69
= control target key start
LH: loop header
LB: loop body
LE: loop exit
PB: predicated region body
PF: predicated region fallthrough
CT: control target
= control target key end

     0   :  { %vm30_vm0 = vcmask 261120   ;;  %vm19_vm1 = vcmask 490496   ;;  %v205_v6 = vmov 0.0   ;;  %s270_s0 = inlined_call_operand.vmem [shape: f32[16,32], index: 0, kind: input, shape index: {}]   ;;  %s271_s1 = inlined_call_operand.vmem [shape: f32[32,60], index: 1, kind: input, shape index: {}]   ;;  %s272_s2 = inlined_call_operand.vmem [shape: f32[1,60], index: 2, kind: input, shape index: {}]   ;;  %s273_s3 = inlined_call_operand.hbm [shape: f32[16,60], index: 3, kind: output, shape index: {}]  }
   0x1   :  { %v26_v0 = vld [vmem:[%s271_s1] sm:$0xff]  ;;  %v27_v1 = vld [vmem:[%s271_s1 + $0x8] sm:$0xff]  ;;  %v28_v2 = vld [vmem:[%s271_s1 + $0x10] sm:$0xff]  ;;  %21 = vst.msk [vmem:[#allocation2 + $0x8] sm:$0xff] %vm19_vm1, %v205_v6 }
   0x2   :  { %v169_v3 = vpack.c.bf16 %v27_v1, %v26_v0  ;;  %v29_v4 = vld [vmem:[%s271_s1 + $0x18] sm:$0xff]  ;;  %v24_v5 = vld [vmem:[%s270_s0] sm:$0xff]  ;;  %20 = vst.msk [vmem:[#allocation2] sm:$0xff] %vm19_vm1, %v205_v6 }
   0x3   :  { %v173_v7 = vpack.c.bf16 %v29_v4, %v28_v2  ;;  %166 = vmatprep.mubr.msk.f32.mxu0 %vm30_vm0, %v24_v5 }
   0x4   :  { %8 = vsyncpa [#allocation4], 0  ;;  %170 = vmatprep.subr.bf16.mxu0 %v169_v3  ;;  %v25_v8 = vld [vmem:[%s270_s0 + $0x8] sm:$0xff]  ;;  %v151_v15 = vld [vmem:[%s272_s2] ss:$0 sm:$0xff]  ;;  %s206_s25 = smov [#allocation3]  }
   0x5   :  { %172 = vmatpush3.bf16.msra.mxu0 %v169_v3  ;;  %s138_s26 = sshll.u32 %s206_s25, 4  ;;  %s139_s26 = int_to_ptr.vmem [resolvable:$true] %s138_s26 }
   0x6   :  { %174 = vmatprep.subr.bf16.mxu0 %v173_v7  ;;  %s181_s0 = scalar_lea.vmem %s139_s26, 256  ;;  %p186_p1 = scmp.lt.s32.totalorder %s139_s26, %s139_s26 }
   0x7   :  { %p182_p0 = scmp.ne.s32.totalorder %s139_s26, %s181_s0  ;;  %p187_p2 = scmp.lt.s32.totalorder %s181_s0, %s181_s0 }
   0x8   :  { %v23_v9 = vld [vmem:[#allocation2 + $0x8] sm:$0xff] }
   0x9   :  { %176 = vmatpush3.bf16.msra.mxu0 %v173_v7  ;;  %v22_v10 = vld [vmem:[#allocation2] sm:$0xff]  ;;  %p188_p3 = por %p187_p2, %p186_p1 }
   0xb   :  { %p189_p4 = pnand %p188_p3, %p182_p0 }
   0xc   :  { %167 = vmatmul.mubr.msk.f32.vlgmr.msra.gmra.mrb[0].mxu0 %vm30_vm0, %v25_v8 }
  0xdf   :  { %v168_v11 = vpop.f32.mrb[0].mxu0 }
  0xe0   :  { %v113_v12 = vadd.f32 %v168_v11, %v23_v9  ;;  %v103_v13 = vpop.f32.mrb[1].mxu0 }
  0xe1   :  { %v112_v14 = vadd.f32 %v103_v13, %v22_v10 }
  0xe2   :  { %116 = vst.msk [vmem:[#allocation2 + $0x8] sm:$0xff] %vm19_vm1, %v113_v12 }
  0xe3   :  { %115 = vst.msk [vmem:[#allocation2] sm:$0xff] %vm19_vm1, %v112_v14 }
  0xe9   :  { %v121_v16 = vld [vmem:[#allocation2 + $0x8] sm:$0xff] }
  0xea   :  { %v120_v17 = vld [vmem:[#allocation2] sm:$0xff]  ;;  %v130_v18 = vadd.f32 %v151_v15, %v121_v16 }
  0xeb   :  { %v129_v19 = vadd.f32 %v151_v15, %v120_v17 }
  0xec   :  { %132 = vst.msk [vmem:[#allocation3 + $0x8] sm:$0xff] %vm19_vm1, %v130_v18 }
  0xed   :  { %131 = vst.msk [vmem:[#allocation3] sm:$0xff] %vm19_vm1, %v129_v19 }
  0xee   :  { %192 = shalt.err (!%p189_p4)
}
  0xef   :  { %s193_s28 = scalar_lea.hbm %s273_s3, 256 }
  0xf0   :  { %p194_p5 = scmp.ne.s32.totalorder %s273_s3, %s193_s28  ;;  %p197_p6 = scmp.lt.u32.totalorder %s193_s28, %s273_s3 }
  0xf2   :  { %p199_p7 = pnand %p197_p6, %p194_p5 }
  0xf4   :  { %202 = shalt.err (!%p199_p7)
}
  0xf5   :  { %s207_s6 = smov 128   ;;  %s208_s7 = smov 8  }
  0xf6   :  { %144 = dma.vmem_to_hbm [thread:$0]  %s139_s26, 256, %s273_s3, [#allocation4], %s207_s6, %s207_s6, %s208_s7  }
  0xf7   :  { %203 = dma.done.wait [#allocation4], 256  }
  0xf8   :  { %204 = vsyncadd [#allocation4], 4294967040 }
  0xf9   :  { %148 = vsyncpa [#allocation4], 1 }

// kernel: transformer_forward.48
= control target key start
LH: loop header
LB: loop body
LE: loop exit
PB: predicated region body
PF: predicated region fallthrough
CT: control target
= control target key end

     0   :  { %s1253_s18 = smov 0   ;;  %s1364_s0 = inlined_call_operand.vmem [shape: f32[2,8,32], index: 0, kind: input, shape index: {}]   ;;  %s1365_s1 = inlined_call_operand.vmem [shape: f32[2,8,32], index: 1, kind: input, shape index: {}]   ;;  %s1366_s2 = inlined_call_operand.vmem [shape: f32[2,8,32], index: 2, kind: input, shape index: {}]   ;;  %s1367_s3 = inlined_call_operand.vmem [shape: f32[2,8,1], index: 3, kind: input, shape index: {}]   ;;  %s1368_s4 = inlined_call_operand.vmem [shape: f32[2,1,8], index: 4, kind: input, shape index: {}]   ;;  %s1369_s5 = inlined_call_operand.vmem [shape: f32[2,8,32], index: 5, kind: output, shape index: {}]  }
   0x1 LB: > { %s1091_s19 = sadd.s32 4294967295, %s1212_s18   ;;  %p1095_p0 = scmp.ge.s32.totalorder %s1212_s18, 1  ;;  %s1212_s18 = sphi %s1253_s18, %s15_s18  }
   0x2   : > { %p221_p1 = scmp.lt.s32.totalorder %s1212_s18, 3 }
   0x4   : > { %p222_p2 = pnand %p1095_p0, %p221_p1 }
   0x5   : > { %p262_p3 = scmp.lt.s32.totalorder (!%p222_p2), %s1091_s19, 1  ;;  %v1214_v0 = vmov (!%p222_p2), 0.0   ;;  %vm1215_vm0 = vmmov (!%p222_p2), 0   ;;  %v1216_v1 = vmov (!%p222_p2), 0   ;;  %vm309_vm1 = vcmask (!%p222_p2), 64512   ;;  %s1217_s30 = smov (!%p222_p2), 120  }
   0x6   : > { %225 = sbr.rel (%p222_p2) target bundleno = 1419 (0x58b), region = 40  ;;  %1132 = vmatprep.subr.mxu0 (!%p222_p2), %v1214_v0  ;;  %1134 = vmatprep.mubr.msk.f32.mxu0 (!%p222_p2), %vm1215_vm0, %v1214_v0  ;;  %s1218_s6 = smov (!%p222_p2), 112   ;;  %v303_v5 = vlaneseq (!%p222_p2)  ;;  %vm987_vm5 = vcmask (!%p222_p2), 130048   ;;  %vm989_vm6 = vcmask (!%p222_p2), 195584   ;;  %vm991_vm7 = vcmask (!%p222_p2), 261120  }
   0x7   : > { %1189 = vset.pattern.permute.xlu0 (!%p222_p2), %v1216_v1  ;;  %1137 = vmatprep.subr.mxu1 (!%p222_p2), %v1214_v0  ;;  %s1219_s10 = smov (!%p222_p2), 104   ;;  %s1220_s14 = smov (!%p222_p2), 8  }
   0x8   : > { %1139 = vmatprep.mubr.msk.f32.mxu1 (!%p222_p2), %vm1215_vm0, %v1214_v0  ;;  %v304_v8 = vshrl.u32 (!%p222_p2), %v303_v5, 7  ;;  %v306_v9 = vand.u32 (!%p222_p2), 127, %v303_v5  ;;  %s1221_s15 = smov (!%p222_p2), 16   ;;  %s1222_s16 = smov (!%p222_p2), 24  }
   0xa   : > { %vm307_vm2 = vcmp.le.s32.totalorder (!%p222_p2), %v306_v9, %v304_v8 }
   0xd   : > { %s1373_s19 = smov (!%p262_p3, %s1091_s19), 1 }
   0xe   : > { %s1267_s20 = sshll.u32 %s1373_s19, 3  ;;  %s280_s9 = scalar_lea.vmem %s1368_s4, %s1373_s19 }
   0xf   : > { %s269_s23 = scalar_lea.vmem %s1365_s1, %s1267_s20  ;;  %s265_s26 = scalar_lea.vmem %s1364_s0, %s1267_s20  ;;  %v1101_v6 = vld [vmem:[%s280_s9] ss:$0 sm:$0xff] }
  0x10   : > { %v286_v2 = vld [vmem:[%s269_s23] sm:$0xff]  ;;  %s277_s29 = scalar_lea.vmem %s1367_s3, %s1267_s20  ;;  %s273_s13 = scalar_lea.vmem %s1366_s2, %s1267_s20 }
  0x11   : > { %1133 = vmatpush3.xpose.msk.msra.mxu0 %vm309_vm1, %v286_v2  ;;  %v285_v3 = vld [vmem:[%s265_s26] sm:$0xff]  ;;  %474 = vrot.lane.b32.xlu1 %v286_v2, %s1217_s30  ;;  %s284_s21 = scalar_lea.vmem %s1369_s5, %s1267_s20 }
  0x12   : > { %v288_v4 = vld [vmem:[%s277_s29] sm:$0xff]  ;;  %1147 = vmatprep.subr.mxu0 %v1214_v0 }
  0x13   : > { %292 = vperm.xlu0 %1189, %v288_v4   ;;  %v1306_v22 = vld [vmem:[%s273_s13] sm:$0xff] }
  0x14   : > { %1135 = vmatmul.mubr.msk.f32.vlgmr.msra.gmra.mrb[0].mxu0 %vm309_vm1, %v285_v3  ;;  %1138 = vmatpush3.msra.mxu1 %v1306_v22 }
  0x15   : > { %1149 = vmatprep.mubr.msk.f32.mxu0 %vm1215_vm0, %v1214_v0  ;;  %472 = vrot.lane.b32.xlu1 %v285_v3, %s1217_s30 }
  0x16   : > { %1142 = vmatprep.subr.mxu1 %v1214_v0 }
  0x19   : > { %642 = vrot.lane.b32.xlu1 %v286_v2, %s1218_s6 }
  0x1d   : > { %640 = vrot.lane.b32.xlu1 %v285_v3, %s1218_s6 }
  0x83   : > { %v475_v23 = vpop.permute.xlu1 %474 }
  0x87   : > { %v473_v24 = vpop.permute.xlu1 %472 }
  0x8b   : > { %v643_v25 = vpop.permute.xlu1 %642 }
  0x8f   : > { %v641_v26 = vpop.permute.xlu1 %640 }
  0x92   : > { %v293_v7 = vpop.permute.xlu0 %292 }
  0x93   : > { %v301_v10 = vmul.f32 %v1101_v6, %v293_v7 }
  0x95   : > { %vm302_vm3 = vcmp.gt.f32.partialorder %v301_v10, 0.5 }
  0x96   : > { %vm1293_vm4 = vmand %vm302_vm3, %vm307_vm2 }
  0xe7   : > { %v382_v12 = vpop.f32.mrb[0].mxu0 }
  0xe8   : > { %v386_v13 = vmul.f32 0.35355338, %v382_v12  ;;  %v1136_v14 = vpop.f32.mrb[1].mxu0 }
  0xea   : > { %v387_v15 = vsel %vm1293_vm4, %v386_v13, -10000.0 }
  0xeb   : > { %v388_v16 = vsel %vm309_vm1, %v387_v15, -inf }
  0xec   : > { %389 = vmax.xlane.f32.xlu0 %v388_v16 }
 0x102   : > { %807 = vrot.lane.b32.xlu0 %v285_v3, %s1219_s10 }
 0x179   : > { %v390_v17 = vpop.xlane.xlu0 %389 }
 0x17a   : > { %v391_v18 = vsub.f32 %v387_v15, %v390_v17 }
 0x17c   : > { %v392_v19 = vmul.f32 1.442695, %v391_v18 }
 0x17d   : > { %v808_v31 = vpop.permute.xlu0 %807 }
 0x17e   : > { %1190 = vpow2.f32 %v392_v19 }
 0x188   : > { %v1191_v20 = vpop.eup %1190 }
 0x189   : > { %v394_v21 = vsel %vm309_vm1, %v1191_v20, 0.0 }
 0x18a   : > { %395 = vadd.xlane.f32.xlu1 %v394_v21 }
 0x19b   : > { %809 = vrot.lane.b32.xlu1 %v286_v2, %s1219_s10 }
 0x217   : > { %v396_v27 = vpop.xlane.xlu1 %395 }
 0x218   : > { %1192 = vrcp.f32 %v396_v27 }
 0x21b   : > { %v810_v30 = vpop.permute.xlu1 %809 }
 0x222   : > { %v1193_v28 = vpop.eup %1192 }
 0x223   : > { %v398_v29 = vmul.f32 %v1193_v28, %v1191_v20 }
 0x225   : > { %1140 = vmatmul.mubr.msk.f32.vlgmr.msra.gmra.mrb[0].mxu1 %vm309_vm1, %v398_v29 }
 0x226   : > { %1143 = vmatpush3.xpose.msk.msra.mxu1 %vm309_vm1, %v475_v23  ;;  %1144 = vmatprep.mubr.msk.f32.mxu1 %vm1215_vm0, %v1214_v0 }
 0x227   : > { %1152 = vmatprep.subr.mxu1 %v1214_v0 }
 0x229   : > { %1145 = vmatmul.mubr.msk.f32.vlgmr.msra.gmra.mrb[2].mxu1 %vm309_vm1, %v473_v24 }
 0x22a   : > { %1153 = vmatpush3.xpose.msk.msra.mxu1 %vm309_vm1, %v643_v25  ;;  %1154 = vmatprep.mubr.msk.f32.mxu1 %vm1215_vm0, %v1214_v0 }
 0x22b   : > { %1162 = vmatprep.subr.mxu1 %v1214_v0 }
 0x22d   : > { %1155 = vmatmul.mubr.msk.f32.vlgmr.msra.gmra.mrb[4].mxu1 %vm309_vm1, %v641_v26 }
 0x22e   : > { %1163 = vmatpush3.xpose.msk.msra.mxu1 %vm309_vm1, %v810_v30  ;;  %1164 = vmatprep.mubr.msk.f32.mxu1 %vm1215_vm0, %v1214_v0 }
 0x231   : > { %1165 = vmatmul.mubr.msk.f32.vlgmr.msra.gmra.mrb[6].mxu1 %vm309_vm1, %v808_v31 }
 0x2f8   : > { %v1326_v32 = vpop.f32.mrb[0].mxu1 }
 0x2f9   : > { %v1141_v33 = vpop.f32.mrb[1].mxu1 }
 0x2fc   : > { %v546_v34 = vpop.f32.mrb[2].mxu1 }
 0x2fd   : > { %v550_v35 = vmul.f32 0.35355338, %v546_v34  ;;  %v1146_v36 = vpop.f32.mrb[3].mxu1 }
 0x2ff   : > { %v551_v37 = vsel %vm1293_vm4, %v550_v35, -10000.0 }
 0x300   : > { %v714_v38 = vpop.f32.mrb[4].mxu1  ;;  %v552_v39 = vsel %vm309_vm1, %v551_v37, -inf }
 0x301   : > { %v718_v40 = vmul.f32 0.35355338, %v714_v38  ;;  %553 = vmax.xlane.f32.xlu1 %v552_v39  ;;  %v1156_v41 = vpop.f32.mrb[5].mxu1 }
 0x303   : > { %v719_v42 = vsel %vm1293_vm4, %v718_v40, -10000.0 }
 0x304   : > { %v881_v43 = vpop.f32.mrb[6].mxu1  ;;  %v720_v44 = vsel %vm309_vm1, %v719_v42, -inf }
 0x305   : > { %v885_v45 = vmul.f32 0.35355338, %v881_v43  ;;  %721 = vmax.xlane.f32.xlu0 %v720_v44  ;;  %v1166_v46 = vpop.f32.mrb[7].mxu1 }
 0x307   : > { %v886_v47 = vsel %vm1293_vm4, %v885_v45, -10000.0 }
 0x308   : > { %v887_v48 = vsel %vm309_vm1, %v886_v47, -inf }
 0x309   : > { %888 = vmax.xlane.f32.xlu1 %v887_v48 }
 0x31a   : > { %731 = vrot.lane.b32.xlu1 %v1306_v22, %s1218_s6 }
 0x31b   : > { %564 = vrot.lane.b32.xlu0 %v1306_v22, %s1217_s30 }
 0x38e   : > { %v554_v49 = vpop.xlane.xlu1 %553 }
 0x38f   : > { %v555_v50 = vsub.f32 %v551_v37, %v554_v49 }
 0x391   : > { %v556_v51 = vmul.f32 1.442695, %v555_v50 }
 0x392   : > { %v722_v52 = vpop.xlane.xlu0 %721 }
 0x393   : > { %1194 = vpow2.f32 %v556_v51  ;;  %v723_v53 = vsub.f32 %v719_v42, %v722_v52 }
 0x395   : > { %v724_v54 = vmul.f32 1.442695, %v723_v53 }
 0x396   : > { %v889_v55 = vpop.xlane.xlu1 %888  ;;  %v565_v1 = vpop.permute.xlu0 %564 }
 0x397   : > { %1196 = vpow2.f32 %v724_v54  ;;  %v890_v56 = vsub.f32 %v886_v47, %v889_v55  ;;  %1148 = vmatpush3.msra.mxu0 %v565_v1 }
 0x398   : > { %1157 = vmatprep.subr.mxu0 %v1214_v0 }
 0x399   : > { %v891_v57 = vmul.f32 1.442695, %v890_v56 }
 0x39a   : > { %v732_v2 = vpop.permute.xlu1 %731 }
 0x39b   : > { %1198 = vpow2.f32 %v891_v57 }
 0x39d   : > { %v1195_v58 = vpop.eup %1194 }
 0x39e   : > { %v558_v59 = vsel %vm309_vm1, %v1195_v58, 0.0 }
 0x39f   : > { %559 = vadd.xlane.f32.xlu1 %v558_v59 }
 0x3a1   : > { %v1197_v60 = vpop.eup %1196 }
 0x3a2   : > { %v726_v61 = vsel %vm309_vm1, %v1197_v60, 0.0 }
 0x3a3   : > { %727 = vadd.xlane.f32.xlu1 %v726_v61 }
 0x3a5   : > { %v1199_v62 = vpop.eup %1198 }
 0x3a6   : > { %v893_v63 = vsel %vm309_vm1, %v1199_v62, 0.0 }
 0x3a7   : > { %894 = vadd.xlane.f32.xlu1 %v893_v63 }
 0x3b8   : > { %898 = vrot.lane.b32.xlu1 %v1306_v22, %s1219_s10 }
 0x42c   : > { %v560_v3 = vpop.xlane.xlu1 %559 }
 0x42d   : > { %1200 = vrcp.f32 %v560_v3 }
 0x430   : > { %v728_v4 = vpop.xlane.xlu1 %727 }
 0x431   : > { %1202 = vrcp.f32 %v728_v4 }
 0x434   : > { %v895_v5 = vpop.xlane.xlu1 %894 }
 0x435   : > { %1204 = vrcp.f32 %v895_v5 }
 0x437   : > { %v1201_v6 = vpop.eup %1200 }
 0x438   : > { %v562_v7 = vmul.f32 %v1201_v6, %v1195_v58  ;;  %v899_v10 = vpop.permute.xlu1 %898 }
 0x43a   : > { %1150 = vmatmul.mubr.msk.f32.vlgmr.msra.gmra.mrb[2].mxu0 %vm309_vm1, %v562_v7 }
 0x43b   : > { %v1203_v8 = vpop.eup %1202  ;;  %1158 = vmatpush3.msra.mxu0 %v732_v2  ;;  %1159 = vmatprep.mubr.msk.f32.mxu0 %vm1215_vm0, %v1214_v0 }
 0x43c   : > { %v730_v9 = vmul.f32 %v1203_v8, %v1197_v60  ;;  %1167 = vmatprep.subr.mxu0 %v1214_v0 }
 0x43e   : > { %1160 = vmatmul.mubr.msk.f32.vlgmr.msra.gmra.mrb[4].mxu0 %vm309_vm1, %v730_v9 }
 0x43f   : > { %v1205_v11 = vpop.eup %1204  ;;  %1168 = vmatpush3.msra.mxu0 %v899_v10  ;;  %1169 = vmatprep.mubr.msk.f32.mxu0 %vm1215_vm0, %v1214_v0 }
 0x440   : > { %v897_v12 = vmul.f32 %v1205_v11, %v1199_v62 }
 0x442   : > { %1170 = vmatmul.mubr.msk.f32.vlgmr.msra.gmra.mrb[6].mxu0 %vm309_vm1, %v897_v12 }
 0x50d   : > { %v636_v13 = vpop.f32.mrb[2].mxu0 }
 0x50e   : > { %975 = vrot.lane.b32.xlu0 %v636_v13, %s1220_s14  ;;  %v1151_v14 = vpop.f32.mrb[3].mxu0 }
 0x511   : > { %v803_v15 = vpop.f32.mrb[4].mxu0 }
 0x512   : > { %979 = vrot.lane.b32.xlu1 %v803_v15, %s1221_s15  ;;  %v1161_v16 = vpop.f32.mrb[5].mxu0 }
 0x515   : > { %v970_v17 = vpop.f32.mrb[6].mxu0 }
 0x516   : > { %983 = vrot.lane.b32.xlu0 %v970_v17, %s1222_s16  ;;  %v1171_v18 = vpop.f32.mrb[7].mxu0 }
 0x580   : > { %v976_v19 = vpop.permute.xlu0 %975 }
 0x581   : > { %v986_v0 = vsel %vm309_vm1, %v1326_v32, %v976_v19 }
 0x584   : > { %v980_v20 = vpop.permute.xlu1 %979 }
 0x585   : > { %v988_v21 = vsel %vm987_vm5, %v986_v0, %v980_v20 }
 0x588   : > { %v984_v22 = vpop.permute.xlu0 %983 }
 0x589   : > { %v990_v23 = vsel %vm989_vm6, %v988_v21, %v984_v22 }
 0x58a   : > { %992 = vst.msk [vmem:[%s284_s21] sm:$0xff] %vm991_vm7, %v990_v23 }
 0x58b PF: > { %s15_s18 = sadd.s32 1, %s1212_s18  }
 0x58c   : > { %p12_p4 = scmp.ge.s32.totalorder %s15_s18, 4  }
 0x58e   :  { %14 = sbr.rel (!%p12_p4) target bundleno = 1 (0x1), region = 82 }

</bundles_post_ra>
